<compile_context>
chip_gen: v6e
topology: v6e:2x2x1
jax: 0.10.0
libtpu: 0.0.40
codegen_flags: <defaults>
</compile_context>

<pallas_src>
import functools
import math

import jax
import jax.numpy as jnp
from jax import lax
from jax.experimental import pallas as pl
from jax.experimental.pallas import tpu as pltpu


# ----------------------------------------------------------------------------
# helpers
# ----------------------------------------------------------------------------
def _rup(x, m):
    return ((x + m - 1) // m) * m


def _pick_tile(d, align, pref, max_waste=0.5):
    """Pick (tile, padded_dim).  Pads d UP to a multiple of the preferred tile
    when the zero-padding waste is acceptable, instead of shrinking the tile
    until it divides the align-rounded size."""
    da = _rup(d, align)
    if da <= pref:
        return da, da
    t = pref
    while t > align:
        dp = _rup(d, t)
        if dp - d <= int(d * max_waste):
            return t, dp
        t //= 2
    return align, da


def _vmem_limit():
    # 3/4 of physical VMEM, capped at 96 MiB (v5e/v6e -> 96 MiB, v7x -> 48 MiB).
    try:
        cap = pltpu.get_tpu_info().vmem_capacity_bytes
        return int(min(cap * 3 // 4, 96 * 1024 * 1024))
    except Exception:
        return 48 * 1024 * 1024


_VMEM_LIMIT = _vmem_limit()
_MIN_MM_ROWS = 64     # below this a Pallas matmul launch is pure overhead
_MIN_EW_ROWS = 256    # below this elementwise / pool kernels fall back to XLA


def _stable_sigmoid(y):
    # exp + approx reciprocal ride the EUP (free slots).  approx -> ~1e-3
    # relative error vs torch.sigmoid; acceptable for inference.
    z = jnp.exp(-jnp.abs(y))
    r = pl.reciprocal(1.0 + z, approx=True)
    return jnp.where(y >= 0, r, z * r)


def _apply_act(y, act):
    if act == "none":
        return y
    if act == "relu":
        return jnp.maximum(y, 0.0)
    if act == "silu":
        return y * _stable_sigmoid(y)
    if act == "sigmoid":
        return _stable_sigmoid(y)
    raise ValueError(act)


def _apply_act_jnp(y, act):
    if act == "none":
        return y
    if act == "relu":
        return jax.nn.relu(y)
    if act == "silu":
        return jax.nn.silu(y)
    if act == "sigmoid":
        return jax.nn.sigmoid(y)
    raise ValueError(act)


# ----------------------------------------------------------------------------
# Pallas kernels
# ----------------------------------------------------------------------------
def _mm_kernel(*refs, act, has_res, res_after_act):
    """Tiled bf16 matmul (K-gridded), f32 accumulate, fused scale/bias/act."""
    if has_res:
        a_ref, b_ref, s_ref, c_ref, r_ref, o_ref, acc_ref = refs
    else:
        a_ref, b_ref, s_ref, c_ref, o_ref, acc_ref = refs
        r_ref = None

    @pl.when(pl.program_id(2) == 0)
    def _():
        acc_ref[...] = jnp.zeros_like(acc_ref)

    acc_ref[...] += jnp.dot(a_ref[...], b_ref[...],
                            preferred_element_type=jnp.float32)

    @pl.when(pl.program_id(2) == pl.num_programs(2) - 1)
    def _():
        y = acc_ref[...] * s_ref[...] + c_ref[...]
        if r_ref is not None and not res_after_act:
            y = y + r_ref[...].astype(jnp.float32)
        y = _apply_act(y, act)
        if r_ref is not None and res_after_act:
            y = y + r_ref[...].astype(jnp.float32)
        o_ref[...] = y.astype(o_ref.dtype)


def _mm_kernel_1k(*refs, act, has_res, res_after_act):
    """Specialized matmul for single-K-step grids: no scratch, no branches."""
    if has_res:
        a_ref, b_ref, s_ref, c_ref, r_ref, o_ref = refs
    else:
        a_ref, b_ref, s_ref, c_ref, o_ref = refs
        r_ref = None
    y = jnp.dot(a_ref[...], b_ref[...], preferred_element_type=jnp.float32)
    y = y * s_ref[...] + c_ref[...]
    if r_ref is not None and not res_after_act:
        y = y + r_ref[...].astype(jnp.float32)
    y = _apply_act(y, act)
    if r_ref is not None and res_after_act:
        y = y + r_ref[...].astype(jnp.float32)
    o_ref[...] = y.astype(o_ref.dtype)


def _dw_img_kernel(p_ref, w_ref, s_ref, c_ref, o_ref, *, act, kh, kw):
    """Depthwise conv, stride 1: whole padded image (one channel block) in
    VMEM; taps are formed with static slices (no HBM tap stack)."""
    ho, wo = o_ref.shape[1], o_ref.shape[2]
    xv = p_ref[0]                                             # (Hp, Wp, cb) bf16
    acc = jnp.zeros((ho, wo, xv.shape[-1]), jnp.float32)
    for i in range(kh):
        for j in range(kw):
            wk = w_ref[i * kw + j:i * kw + j + 1, :].astype(jnp.float32)   # (1, cb)
            acc = acc + xv[i:i + ho, j:j + wo, :].astype(jnp.float32) * wk
    y = acc * s_ref[...] + c_ref[...]
    o_ref[0] = _apply_act(y, act).astype(o_ref.dtype)


def _dw_kernel(p_ref, w_ref, s_ref, c_ref, o_ref, *, act, taps):
    """Depthwise conv fallback (stride > 1): tap-major (taps, M, C) layout."""
    acc = jnp.zeros(o_ref.shape, jnp.float32)
    for k in range(taps):
        acc += p_ref[k].astype(jnp.float32) * w_ref[k].astype(jnp.float32)
    y = acc * s_ref[...] + c_ref[...]
    o_ref[...] = _apply_act(y, act).astype(o_ref.dtype)


def _pool_kernel(x_ref, avg_ref, max_ref, sum_sc, max_sc, *, valid_m, denom, tr):
    """Global spatial avg & max pooling, tiled over row blocks (reduction)."""
    j = pl.program_id(1)

    @pl.when(j == 0)
    def _():
        sum_sc[...] = jnp.zeros_like(sum_sc)
        max_sc[...] = jnp.full_like(max_sc, -jnp.inf)

    x = x_ref[0].astype(jnp.float32)                          # (tr, Cp)
    row = lax.broadcasted_iota(jnp.int32, x.shape, 0) + j * tr
    mask = row < valid_m
    sum_sc[...] += jnp.sum(jnp.where(mask, x, 0.0), axis=0, keepdims=True)
    max_sc[...] = jnp.maximum(
        max_sc[...], jnp.max(jnp.where(mask, x, -jnp.inf), axis=0, keepdims=True))

    @pl.when(j == pl.num_programs(1) - 1)
    def _():
        avg_ref[0] = sum_sc[...] * (1.0 / denom)
        max_ref[0] = max_sc[...]


def _gate_stats_kernel(x_ref, cg_ref, o_ref, st_ref, *, valid_c):
    """x1 = x * channel_gate; per-pixel mean/max over channels of x1 packed
    lane-dense as a (1, 2, tr) block (row 0 = mean, row 1 = max)."""
    x1 = x_ref[...].astype(jnp.float32) * cg_ref[...].astype(jnp.float32)
    o_ref[...] = x1.astype(o_ref.dtype)
    col = lax.broadcasted_iota(jnp.int32, x1.shape, 2)
    mask = col < valid_c
    mean_r = jnp.sum(jnp.where(mask, x1, 0.0), axis=2) * (1.0 / valid_c)   # (1, tr)
    max_r = jnp.max(jnp.where(mask, x1, -jnp.inf), axis=2)                 # (1, tr)
    st_ref[...] = jnp.concatenate([mean_r, max_r], axis=0)[None]           # (1,2,tr)


def _gate_kernel(x_ref, cg_ref, sg_ref, o_ref):
    """x * channel_gate * spatial_gate (broadcasting over the block)."""
    o_ref[...] = (x_ref[...].astype(jnp.float32)
                  * cg_ref[...].astype(jnp.float32)
                  * sg_ref[...].astype(jnp.float32)).astype(o_ref.dtype)


def _add_kernel(a_ref, b_ref, o_ref, *, act):
    y = a_ref[...].astype(jnp.float32) + b_ref[...].astype(jnp.float32)
    o_ref[...] = _apply_act(y, act).astype(o_ref.dtype)


# ----------------------------------------------------------------------------
# Pallas wrappers (padding / im2col glue in plain JAX)
# ----------------------------------------------------------------------------
def _matmul_jnp(a, b, scale, bias, act, residual, res_after_act):
    y = jnp.dot(a.astype(jnp.bfloat16), b.astype(jnp.bfloat16),
                preferred_element_type=jnp.float32)
    y = y * scale.astype(jnp.float32) + bias.astype(jnp.float32)
    if residual is not None and not res_after_act:
        y = y + residual.astype(jnp.float32)
    y = _apply_act_jnp(y, act)
    if residual is not None and res_after_act:
        y = y + residual.astype(jnp.float32)
    return y


def matmul_scale_bias_act(a, b, scale, bias, act="none", residual=None,
                          res_after_act=False, out_dtype=jnp.bfloat16):
    """a:(M,K) @ b:(K,N) in bf16, epilogue: *scale +bias [+res] +act in f32."""
    M, K = a.shape
    _, N = b.shape
    if M < _MIN_MM_ROWS:
        # Tiny-M (SE FCs, CBAM MLP, deep 2x2 maps): dispatch-bound -> plain XLA.
        return _matmul_jnp(a, b, scale, bias, act, residual,
                           res_after_act).astype(out_dtype)

    tm, Mp = _pick_tile(M, 16, 512)          # bf16 sublane packing -> 16-align
    tn, Np = _pick_tile(N, 128, 256, max_waste=0.65)
    tk, Kp = _pick_tile(K, 128, 512)
    ap = jnp.pad(a.astype(jnp.bfloat16), ((0, Mp - M), (0, Kp - K)))
    bp = jnp.pad(b.astype(jnp.bfloat16), ((0, Kp - K), (0, Np - N)))
    sp = jnp.pad(scale.astype(jnp.float32), (0, Np - N)).reshape(1, Np)
    cp = jnp.pad(bias.astype(jnp.float32), (0, Np - N)).reshape(1, Np)
    has_res = residual is not None
    rp = None
    if has_res:
        rp = jnp.pad(residual.astype(jnp.bfloat16), ((0, Mp - M), (0, Np - N)))

    if Kp // tk == 1:
        inputs = [ap, bp, sp, cp]
        in_specs = [pl.BlockSpec((tm, tk), lambda i, j: (i, 0)),
                    pl.BlockSpec((tk, tn), lambda i, j: (0, j)),
                    pl.BlockSpec((1, tn), lambda i, j: (0, j)),
                    pl.BlockSpec((1, tn), lambda i, j: (0, j))]
        if has_res:
            inputs.append(rp)
            in_specs.append(pl.BlockSpec((tm, tn), lambda i, j: (i, j)))
        out = pl.pallas_call(
            functools.partial(_mm_kernel_1k, act=act, has_res=has_res,
                              res_after_act=res_after_act),
            out_shape=jax.ShapeDtypeStruct((Mp, Np), out_dtype),
            grid=(Mp // tm, Np // tn),
            in_specs=in_specs,
            out_specs=pl.BlockSpec((tm, tn), lambda i, j: (i, j)),
            compiler_params=pltpu.CompilerParams(
                dimension_semantics=("parallel", "parallel"),
                vmem_limit_bytes=_VMEM_LIMIT),
        )(*inputs)
    else:
        inputs = [ap, bp, sp, cp]
        in_specs = [pl.BlockSpec((tm, tk), lambda i, j, k: (i, k)),
                    pl.BlockSpec((tk, tn), lambda i, j, k: (k, j)),
                    pl.BlockSpec((1, tn), lambda i, j, k: (0, j)),
                    pl.BlockSpec((1, tn), lambda i, j, k: (0, j))]
        if has_res:
            inputs.append(rp)
            in_specs.append(pl.BlockSpec((tm, tn), lambda i, j, k: (i, j)))
        out = pl.pallas_call(
            functools.partial(_mm_kernel, act=act, has_res=has_res,
                              res_after_act=res_after_act),
            out_shape=jax.ShapeDtypeStruct((Mp, Np), out_dtype),
            grid=(Mp // tm, Np // tn, Kp // tk),
            in_specs=in_specs,
            out_specs=pl.BlockSpec((tm, tn), lambda i, j, k: (i, j)),
            scratch_shapes=[pltpu.VMEM((tm, tn), jnp.float32)],
            compiler_params=pltpu.CompilerParams(
                dimension_semantics=("parallel", "parallel", "arbitrary"),
                vmem_limit_bytes=_VMEM_LIMIT),
        )(*inputs)
    return out[:M, :N]


def conv2d(x, w, *, stride=1, padding=0, scale=None, bias=None, act="none",
           residual=None, res_after_act=False, out_dtype=jnp.bfloat16):
    """x:(N,H,W,Cin), w:(kh,kw,Cin,Cout) -> (N,Ho,Wo,Cout)."""
    n, h, wd, cin = x.shape
    kh, kw, _, cout = w.shape
    if scale is None:
        scale = jnp.ones((cout,), jnp.float32)
    if bias is None:
        bias = jnp.zeros((cout,), jnp.float32)
    xb = x.astype(jnp.bfloat16)
    if kh == 1 and kw == 1 and stride == 1 and padding == 0:
        ho, wo = h, wd
        patches = xb.reshape(n * h * wd, cin)
    else:
        # TODO(synk): im2col is still XLA-materialized (kh*kw x activation
        # traffic); folding taps into the matmul K grid needs halo manual DMA.
        xp = jnp.pad(xb, ((0, 0), (padding, padding), (padding, padding), (0, 0)))
        ho = (h + 2 * padding - kh) // stride + 1
        wo = (wd + 2 * padding - kw) // stride + 1
        taps = [xp[:, i:i + stride * ho:stride, j:j + stride * wo:stride, :]
                for i in range(kh) for j in range(kw)]
        patches = jnp.concatenate(taps, axis=-1).reshape(n * ho * wo, kh * kw * cin)
    wmat = w.reshape(kh * kw * cin, cout).astype(jnp.bfloat16)
    res2d = None
    if residual is not None:
        res2d = residual.reshape(n * ho * wo, cout)
    out = matmul_scale_bias_act(patches, wmat, scale, bias, act,
                                residual=res2d, res_after_act=res_after_act,
                                out_dtype=out_dtype)
    return out.reshape(n, ho, wo, cout)


def depthwise_conv2d(x, w, *, stride=1, padding=1, scale=None, bias=None, act="none"):
    """x:(N,H,W,C), w:(kh,kw,C)."""
    n, h, wd, c = x.shape
    kh, kw, _ = w.shape
    if scale is None:
        scale = jnp.ones((c,), jnp.float32)
    if bias is None:
        bias = jnp.zeros((c,), jnp.float32)
    ho = (h + 2 * padding - kh) // stride + 1
    wo = (wd + 2 * padding - kw) // stride + 1
    Cp = _rup(c, 128)
    sp = jnp.pad(scale.astype(jnp.float32), (0, Cp - c)).reshape(1, Cp)
    bp = jnp.pad(bias.astype(jnp.float32), (0, Cp - c)).reshape(1, Cp)
    wm = jnp.pad(w.reshape(kh * kw, c).astype(jnp.float32), ((0, 0), (0, Cp - c)))

    if stride == 1:
        # Per-image, per-channel-block kernel: padded map read once from HBM.
        hp, wp = h + 2 * padding, wd + 2 * padding
        xp = jnp.pad(x.astype(jnp.bfloat16),
                     ((0, 0), (padding, padding), (padding, padding), (0, Cp - c)))
        cb = math.gcd(Cp, 512)
        # Cap channel block so double-buffered input + f32 acc stay well under
        # the VMEM budget (important on v7x's 64 MiB physical VMEM).
        while cb > 128 and (2 * hp * wp * cb * 2 + 6 * ho * wo * cb) > 24 * 1024 * 1024:
            cb //= 2
        out = pl.pallas_call(
            functools.partial(_dw_img_kernel, act=act, kh=kh, kw=kw),
            out_shape=jax.ShapeDtypeStruct((n, ho, wo, Cp), jnp.bfloat16),
            grid=(n, Cp // cb),
            in_specs=[pl.BlockSpec((1, hp, wp, cb), lambda i, j: (i, 0, 0, j)),
                      pl.BlockSpec((kh * kw, cb), lambda i, j: (0, j)),
                      pl.BlockSpec((1, cb), lambda i, j: (0, j)),
                      pl.BlockSpec((1, cb), lambda i, j: (0, j))],
            out_specs=pl.BlockSpec((1, ho, wo, cb), lambda i, j: (i, 0, 0, j)),
            compiler_params=pltpu.CompilerParams(
                dimension_semantics=("parallel", "parallel"),
                vmem_limit_bytes=_VMEM_LIMIT),
        )(xp, wm, sp, bp)
        return out[..., :c]

    # stride > 1 (only 2 blocks in the net, tiny maps): tap-major fallback.
    xb = x.astype(jnp.bfloat16)
    xp = jnp.pad(xb, ((0, 0), (padding, padding), (padding, padding), (0, 0)))
    taps = [xp[:, i:i + stride * ho:stride, j:j + stride * wo:stride, :]
            for i in range(kh) for j in range(kw)]
    m = n * ho * wo
    nt = kh * kw
    pat = jnp.stack(taps, axis=0).reshape(nt, m, c)
    tr, Mp = _pick_tile(m, 8, 512)
    pat = jnp.pad(pat, ((0, 0), (0, Mp - m), (0, Cp - c)))
    out = pl.pallas_call(
        functools.partial(_dw_kernel, act=act, taps=nt),
        out_shape=jax.ShapeDtypeStruct((Mp, Cp), jnp.bfloat16),
        grid=(Mp // tr,),
        in_specs=[pl.BlockSpec((nt, tr, Cp), lambda i: (0, i, 0)),
                  pl.BlockSpec((nt, Cp), lambda i: (0, 0)),
                  pl.BlockSpec((1, Cp), lambda i: (0, 0)),
                  pl.BlockSpec((1, Cp), lambda i: (0, 0))],
        out_specs=pl.BlockSpec((tr, Cp), lambda i: (i, 0)),
        compiler_params=pltpu.CompilerParams(
            dimension_semantics=("parallel",),
            vmem_limit_bytes=_VMEM_LIMIT),
    )(pat, wm, sp, bp)
    return out[:m, :c].reshape(n, ho, wo, c)


def spatial_pool(x):
    """(N,H,W,C) -> global avg (N,C), global max (N,C) in f32."""
    n, h, w, c = x.shape
    m = h * w
    if m < _MIN_EW_ROWS:
        xf = x.reshape(n, m, c).astype(jnp.float32)
        return jnp.mean(xf, axis=1), jnp.max(xf, axis=1)
    tr, Mp = _pick_tile(m, 8, 512)
    Cp = _rup(c, 128)
    xr = jnp.pad(x.reshape(n, m, c), ((0, 0), (0, Mp - m), (0, Cp - c)))
    avg, mx = pl.pallas_call(
        functools.partial(_pool_kernel, valid_m=m, denom=float(m), tr=tr),
        out_shape=(jax.ShapeDtypeStruct((n, 1, Cp), jnp.float32),
                   jax.ShapeDtypeStruct((n, 1, Cp), jnp.float32)),
        grid=(n, Mp // tr),
        in_specs=[pl.BlockSpec((1, tr, Cp), lambda i, j: (i, j, 0))],
        out_specs=(pl.BlockSpec((1, 1, Cp), lambda i, j: (i, 0, 0)),
                   pl.BlockSpec((1, 1, Cp), lambda i, j: (i, 0, 0))),
        scratch_shapes=[pltpu.VMEM((1, Cp), jnp.float32),
                        pltpu.VMEM((1, Cp), jnp.float32)],
        compiler_params=pltpu.CompilerParams(
            dimension_semantics=("parallel", "arbitrary"),
            vmem_limit_bytes=_VMEM_LIMIT),
    )(xr)
    return avg[:, 0, :c], mx[:, 0, :c]


def gate_channel_and_stats(x, cg):
    """x1 = x * cg (per channel); per-pixel mean/max over channels of x1.
    Returns x1 (N,H,W,C) bf16 and stats (N,H,W,2) f32."""
    n, h, w, c = x.shape
    m = h * w
    if m < _MIN_EW_ROWS:
        x1f = x.astype(jnp.float32) * cg.astype(jnp.float32)[:, None, None, :]
        stat = jnp.stack([jnp.mean(x1f, axis=-1), jnp.max(x1f, axis=-1)], axis=-1)
        return x1f.astype(jnp.bfloat16), stat
    tr, Mp = _pick_tile(m, 128, 512)
    Cp = _rup(c, 128)
    xr = jnp.pad(x.reshape(n, m, c).astype(jnp.bfloat16),
                 ((0, 0), (0, Mp - m), (0, Cp - c)))
    cgp = jnp.pad(cg.astype(jnp.float32), ((0, 0), (0, Cp - c))).reshape(n, 1, Cp)
    x1, st = pl.pallas_call(
        functools.partial(_gate_stats_kernel, valid_c=c),
        out_shape=(jax.ShapeDtypeStruct((n, Mp, Cp), jnp.bfloat16),
                   jax.ShapeDtypeStruct((n, 2, Mp), jnp.float32)),
        grid=(n, Mp // tr),
        in_specs=[pl.BlockSpec((1, tr, Cp), lambda i, j: (i, j, 0)),
                  pl.BlockSpec((1, 1, Cp), lambda i, j: (i, 0, 0))],
        out_specs=(pl.BlockSpec((1, tr, Cp), lambda i, j: (i, j, 0)),
                   pl.BlockSpec((1, 2, tr), lambda i, j: (i, 0, j))),
        compiler_params=pltpu.CompilerParams(
            dimension_semantics=("parallel", "parallel"),
            vmem_limit_bytes=_VMEM_LIMIT),
    )(xr, cgp)
    x1 = x1[:, :m, :c].reshape(n, h, w, c)
    stat = jnp.transpose(st[:, :, :m], (0, 2, 1)).reshape(n, h, w, 2)
    return x1, stat


def apply_gates(x, cg=None, sg=None):
    """x:(N,H,W,C) * channel gate (N,C) * spatial gate (N,H*W)."""
    n, h, w, c = x.shape
    m = h * w
    if m < _MIN_EW_ROWS:
        y = x.astype(jnp.float32)
        if cg is not None:
            y = y * cg.astype(jnp.float32)[:, None, None, :]
        if sg is not None:
            y = y * sg.astype(jnp.float32).reshape(n, h, w, 1)
        return y.astype(jnp.bfloat16)
    tr, Mp = _pick_tile(m, 8, 512)
    Cp = _rup(c, 128)
    xr = jnp.pad(x.reshape(n, m, c), ((0, 0), (0, Mp - m), (0, Cp - c)))
    if cg is None:
        cgp = jnp.ones((n, 1, Cp), jnp.float32)
    else:
        cgp = jnp.pad(cg.astype(jnp.float32), ((0, 0), (0, Cp - c))).reshape(n, 1, Cp)
    if sg is None:
        sgp = jnp.ones((n, Mp, 1), jnp.float32)
    else:
        sgp = jnp.pad(sg.astype(jnp.float32), ((0, 0), (0, Mp - m))).reshape(n, Mp, 1)
    out = pl.pallas_call(
        _gate_kernel,
        out_shape=jax.ShapeDtypeStruct((n, Mp, Cp), jnp.bfloat16),
        grid=(n, Mp // tr),
        in_specs=[pl.BlockSpec((1, tr, Cp), lambda i, j: (i, j, 0)),
                  pl.BlockSpec((1, 1, Cp), lambda i, j: (i, 0, 0)),
                  pl.BlockSpec((1, tr, 1), lambda i, j: (i, j, 0))],
        out_specs=pl.BlockSpec((1, tr, Cp), lambda i, j: (i, j, 0)),
        compiler_params=pltpu.CompilerParams(
            dimension_semantics=("parallel", "parallel"),
            vmem_limit_bytes=_VMEM_LIMIT),
    )(xr, cgp, sgp)
    return out[:, :m, :c].reshape(n, h, w, c)


def add_act(a, b, act="none", out_dtype=jnp.bfloat16):
    shape = a.shape
    c = shape[-1]
    m = int(math.prod(shape[:-1]))
    if m < _MIN_EW_ROWS:
        y = a.astype(jnp.float32) + b.astype(jnp.float32)
        return _apply_act_jnp(y, act).astype(out_dtype)
    tr, Mp = _pick_tile(m, 8, 512)
    Cp = _rup(c, 128)
    ar = jnp.pad(a.reshape(m, c), ((0, Mp - m), (0, Cp - c)))
    br = jnp.pad(b.reshape(m, c), ((0, Mp - m), (0, Cp - c)))
    out = pl.pallas_call(
        functools.partial(_add_kernel, act=act),
        out_shape=jax.ShapeDtypeStruct((Mp, Cp), out_dtype),
        grid=(Mp // tr,),
        in_specs=[pl.BlockSpec((tr, Cp), lambda i: (i, 0)),
                  pl.BlockSpec((tr, Cp), lambda i: (i, 0))],
        out_specs=pl.BlockSpec((tr, Cp), lambda i: (i, 0)),
        compiler_params=pltpu.CompilerParams(
            dimension_semantics=("parallel",),
            vmem_limit_bytes=_VMEM_LIMIT),
    )(ar, br)
    return out[:m, :c].reshape(shape)


# ----------------------------------------------------------------------------
# parameters (deterministic synthetic init)
# ----------------------------------------------------------------------------
class ParamGen:
    def __init__(self, key):
        self._key = key
        self._i = 0

    def _next(self):
        self._i += 1
        return jax.random.fold_in(self._key, self._i)

    def conv(self, kh, kw, cin, cout):
        fan = kh * kw * cin
        return jax.random.normal(self._next(), (kh, kw, cin, cout),
                                 jnp.float32) / math.sqrt(fan)

    def dwconv(self, kh, kw, c):
        return jax.random.normal(self._next(), (kh, kw, c),
                                 jnp.float32) / math.sqrt(kh * kw)

    def bias(self, c):
        return jnp.zeros((c,), jnp.float32)

    def bn(self, c, eps=1e-3):
        return dict(gamma=jnp.ones((c,), jnp.float32),
                    beta=jnp.zeros((c,), jnp.float32),
                    mean=jnp.zeros((c,), jnp.float32),
                    var=jnp.ones((c,), jnp.float32),
                    eps=eps)


def bn_fold(bn):
    s = bn["gamma"] / jnp.sqrt(bn["var"] + bn["eps"])
    b = bn["beta"] - bn["mean"] * s
    return s, b


def make_conv_bn(pg, k, cin, cout):
    return dict(w=pg.conv(k, k, cin, cout), bn=pg.bn(cout))


def conv_bn_act(x, p, *, stride=1, act="silu", residual=None, res_after_act=False):
    k = p["w"].shape[0]
    s, b = bn_fold(p["bn"])
    return conv2d(x, p["w"], stride=stride, padding=k // 2, scale=s, bias=b,
                  act=act, residual=residual, res_after_act=res_after_act)


# --- EfficientNetV2-S encoder blocks ---------------------------------------
def make_fused_mbconv(pg, cin, cout, expand, stride):
    p = dict(kind="fused", expand=expand, stride=stride, cin=cin, cout=cout)
    if expand != 1:
        cexp = cin * expand
        p["expand_conv"] = make_conv_bn(pg, 3, cin, cexp)
        p["project"] = make_conv_bn(pg, 1, cexp, cout)
    else:
        p["main"] = make_conv_bn(pg, 3, cin, cout)
    return p


def fused_mbconv(x, p):
    use_res = p["stride"] == 1 and p["cin"] == p["cout"]
    res = x if use_res else None
    if p["expand"] != 1:
        y = conv_bn_act(x, p["expand_conv"], stride=p["stride"], act="silu")
        # residual fused into the project-conv epilogue (act=none)
        y = conv_bn_act(y, p["project"], act="none", residual=res)
    else:
        # residual added AFTER the SiLU, matching y = silu(bn(conv(x))) + x
        y = conv_bn_act(x, p["main"], stride=p["stride"], act="silu",
                        residual=res, res_after_act=True)
    return y


def make_mbconv(pg, cin, cout, expand, stride):
    cexp = cin * expand
    csq = max(1, cin // 4)
    return dict(kind="mb", cin=cin, cout=cout, stride=stride,
                expand_conv=make_conv_bn(pg, 1, cin, cexp),
                dw_w=pg.dwconv(3, 3, cexp), dw_bn=pg.bn(cexp),
                se_fc1_w=pg.conv(1, 1, cexp, csq), se_fc1_b=pg.bias(csq),
                se_fc2_w=pg.conv(1, 1, csq, cexp), se_fc2_b=pg.bias(cexp),
                project=make_conv_bn(pg, 1, cexp, cout))


def mbconv(x, p):
    use_res = p["stride"] == 1 and p["cin"] == p["cout"]
    res = x if use_res else None
    y = conv_bn_act(x, p["expand_conv"], act="silu")
    s, b = bn_fold(p["dw_bn"])
    y = depthwise_conv2d(y, p["dw_w"], stride=p["stride"], padding=1,
                         scale=s, bias=b, act="silu")
    # Squeeze-Excitation (tiny M -> routed to plain XLA inside the wrappers)
    cexp = y.shape[-1]
    csq = p["se_fc1_w"].shape[-1]
    avg, _ = spatial_pool(y)
    z = matmul_scale_bias_act(avg, p["se_fc1_w"].reshape(cexp, csq),
                              jnp.ones((csq,), jnp.float32), p["se_fc1_b"],
                              act="silu", out_dtype=jnp.float32)
    g = matmul_scale_bias_act(z, p["se_fc2_w"].reshape(csq, cexp),
                              jnp.ones((cexp,), jnp.float32), p["se_fc2_b"],
                              act="sigmoid", out_dtype=jnp.float32)
    y = apply_gates(y, cg=g)
    # residual fused into the project-conv epilogue
    y = conv_bn_act(y, p["project"], act="none", residual=res)
    return y


def make_stage(pg, n, cin, cout, expand, stride, mb):
    blocks = []
    for i in range(n):
        ci = cin if i == 0 else cout
        st = stride if i == 0 else 1
        blocks.append(make_mbconv(pg, ci, cout, expand, st) if mb
                      else make_fused_mbconv(pg, ci, cout, expand, st))
    return blocks


def run_stage(x, blocks):
    for p in blocks:
        x = mbconv(x, p) if p["kind"] == "mb" else fused_mbconv(x, p)
    return x


def make_encoder(pg):
    return dict(
        stem=make_conv_bn(pg, 3, 3, 24),
        s1=make_stage(pg, 2, 24, 24, 1, 1, mb=False),
        s2=make_stage(pg, 4, 24, 48, 4, 2, mb=False),
        s3=make_stage(pg, 4, 48, 64, 4, 2, mb=False),
        s4=make_stage(pg, 6, 64, 128, 4, 2, mb=True),
        s5=make_stage(pg, 9, 128, 160, 6, 1, mb=True),
        s6=make_stage(pg, 15, 160, 256, 6, 2, mb=True),
        head=make_conv_bn(pg, 1, 256, 1280),
    )


# --- decoder / attention ----------------------------------------------------
def make_decoder_block(pg, cin, cout, use_skip=False):
    return dict(use_skip=use_skip,
                conv1=make_conv_bn(pg, 3, cin, cout),
                conv2=make_conv_bn(pg, 3, cout, cout),
                shortcut=make_conv_bn(pg, 1, cin, cout))


def upsample2x(x):
    # TODO(synk): nearest-upsample could be fused into the next conv's
    # index_map / in-kernel replication to avoid the 4x HBM round-trip.
    return jnp.repeat(jnp.repeat(x, 2, axis=1), 2, axis=2)


def resize_nearest(x, h, w):
    return jnp.repeat(jnp.repeat(x, h // x.shape[1], axis=1), w // x.shape[2], axis=2)


def decoder_block(x, p, skip=None):
    x = upsample2x(x)
    if p["use_skip"] and skip is not None:
        skip = resize_nearest(skip, x.shape[1], x.shape[2])
        x = add_act(x, skip, act="none")
    sc = conv_bn_act(x, p["shortcut"], act="none")          # 1x1 shortcut
    y = conv_bn_act(x, p["conv1"], act="relu")
    # residual (+shortcut) and final ReLU fused into conv2's matmul epilogue
    y = conv_bn_act(y, p["conv2"], act="relu", residual=sc)
    return y


def make_cbam(pg, c, r=16):
    cr = max(1, c // r)
    return dict(c=c, cr=cr,
                fc1=pg.conv(1, 1, c, cr).reshape(c, cr),
                fc2=pg.conv(1, 1, cr, c).reshape(cr, c),
                sconv=pg.conv(7, 7, 2, 1), sbias=pg.bias(1))


def cbam(x, p):
    n, h, w, c = x.shape
    cr = p["cr"]
    avg, mx = spatial_pool(x)
    # channel MLP on stacked [avg; max] rows (tiny M -> plain XLA path)
    am = jnp.concatenate([avg, mx], axis=0)                 # (2N, C)
    hid = matmul_scale_bias_act(am, p["fc1"], jnp.ones((cr,), jnp.float32),
                                jnp.zeros((cr,), jnp.float32), act="relu",
                                out_dtype=jnp.float32)
    out2 = matmul_scale_bias_act(hid, p["fc2"], jnp.ones((c,), jnp.float32),
                                 jnp.zeros((c,), jnp.float32), act="none",
                                 out_dtype=jnp.float32)
    cg = jax.nn.sigmoid(out2[:n] + out2[n:])                # channel gate (N,C)
    # channel gating fused with lane-dense channel mean/max stats (x read once)
    x1, stat = gate_channel_and_stats(x, cg)
    sg = conv2d(stat, p["sconv"], stride=1, padding=3,
                bias=p["sbias"], act="sigmoid")             # (N,H,W,1)
    return apply_gates(x1, sg=sg.reshape(n, h * w))


# ----------------------------------------------------------------------------
# model
# ----------------------------------------------------------------------------
def make_params(key):
    pg = ParamGen(key)
    return dict(
        encoder=make_encoder(pg),
        decoder1=make_decoder_block(pg, 1280, 640),
        decoder2=make_decoder_block(pg, 640, 320, use_skip=True),
        decoder3=make_decoder_block(pg, 320, 160, use_skip=True),
        decoder4=make_decoder_block(pg, 160, 64, use_skip=True),
        attention1=make_cbam(pg, 640),
        attention2=make_cbam(pg, 320),
        attention3=make_cbam(pg, 160),
        attention4=make_cbam(pg, 64),
        adjust_enc4_w=pg.conv(1, 1, 1280, 640), adjust_enc4_b=pg.bias(640),
        adjust_enc3_w=pg.conv(1, 1, 160, 320), adjust_enc3_b=pg.bias(320),
        adjust_enc2_w=pg.conv(1, 1, 64, 160), adjust_enc2_b=pg.bias(160),
        adjust_out_w=pg.conv(1, 1, 64, 32), adjust_out_b=pg.bias(32),
    )


def efficient_unet_forward(params, x_nchw):
    x = jnp.transpose(x_nchw, (0, 2, 3, 1)).astype(jnp.float32)   # NCHW -> NHWC
    enc = params["encoder"]
    # encoder[0:2] : stem conv + stage 1
    x = conv_bn_act(x, enc["stem"], stride=2, act="silu")
    x = run_stage(x, enc["s1"])
    # encoder[2:4] -> enc2 (64 ch, /8)
    enc2 = run_stage(run_stage(x, enc["s2"]), enc["s3"])
    # encoder[4:6] -> enc3 (160 ch, /16)
    enc3 = run_stage(run_stage(enc2, enc["s4"]), enc["s5"])
    # encoder[6:8] -> enc4 (1280 ch, /32)
    enc4 = conv_bn_act(run_stage(enc3, enc["s6"]), enc["head"], act="silu")
    # encoder[8:] is an empty Sequential slice -> identity
    enc5 = enc4

    x = decoder_block(enc5, params["decoder1"])
    x = cbam(x, params["attention1"])
    skip4 = conv2d(enc4, params["adjust_enc4_w"], padding=0,
                   bias=params["adjust_enc4_b"])
    x = decoder_block(x, params["decoder2"], skip4)
    x = cbam(x, params["attention2"])
    skip3 = conv2d(enc3, params["adjust_enc3_w"], padding=0,
                   bias=params["adjust_enc3_b"])
    x = decoder_block(x, params["decoder3"], skip3)
    x = cbam(x, params["attention3"])
    skip2 = conv2d(enc2, params["adjust_enc2_w"], padding=0,
                   bias=params["adjust_enc2_b"])
    x = decoder_block(x, params["decoder4"], skip2)
    x = cbam(x, params["attention4"])

    # adjust_out: 1x1 conv 64->32, AdaptiveAvgPool2d((1,1)), Flatten
    y = conv2d(x, params["adjust_out_w"], padding=0, bias=params["adjust_out_b"])
    avg, _ = spatial_pool(y)
    return avg                                                    # (N, 32) f32


if __name__ == "__main__":
    root = jax.random.PRNGKey(0)
    params = make_params(jax.random.fold_in(root, 1))
    x = jax.random.normal(jax.random.fold_in(root, 2), (2, 3, 64, 64), jnp.float32)

    out = efficient_unet_forward(params, x)
    out = jax.block_until_ready(out)

    assert out.shape == (2, 32), out.shape
    assert bool(jnp.all(jnp.isfinite(out)))
    print("KERNEL_OK")
</pallas_src>

<mosaic_0001>
module attributes {stable_mosaic.version = 11 : i64} {
  func.func @_mm_kernel_1k(%arg0: i32, %arg1: i32, %arg2: memref<512x128xbf16, #tpu.memory_space<vmem>>, %arg3: memref<128x128xbf16, #tpu.memory_space<vmem>>, %arg4: memref<1x128xf32, #tpu.memory_space<vmem>>, %arg5: memref<1x128xf32, #tpu.memory_space<vmem>>, %arg6: memref<512x128xbf16, #tpu.memory_space<vmem>>) attributes {dimension_semantics = [#tpu.dimension_semantics<parallel>, #tpu.dimension_semantics<parallel>], iteration_bounds = array<i64: 4, 1>, scalar_prefetch = 0 : i64, scratch_operands = 0 : i64, tpu.core_type = #tpu.core_type<tc>, window_params = [{transform_indices = @transform_0, window_bounds = array<i64: 512, 128>}, {transform_indices = @transform_1, window_bounds = array<i64: 128, 128>}, {transform_indices = @transform_2, window_bounds = array<i64: 1, 128>}, {transform_indices = @transform_3, window_bounds = array<i64: 1, 128>}, {transform_indices = @transform_4, window_bounds = array<i64: 512, 128>}]} {
    %c0 = arith.constant 0 : index
    %c0_0 = arith.constant 0 : index
    %0 = vector.load %arg2[%c0, %c0_0] : memref<512x128xbf16, #tpu.memory_space<vmem>>, vector<512x128xbf16>
    %c0_1 = arith.constant 0 : index
    %c0_2 = arith.constant 0 : index
    %1 = vector.load %arg3[%c0_1, %c0_2] : memref<128x128xbf16, #tpu.memory_space<vmem>>, vector<128x128xbf16>
    %cst = arith.constant dense<0.000000e+00> : vector<512x128xf32>
    %2 = tpu.matmul %0, %1, %cst {dimension_numbers = #tpu.dot_dimension_numbers<[1], [0], [0], [1], [0, 0, 1, 1], [], []>} : vector<512x128xbf16>, vector<128x128xbf16>, vector<512x128xf32> -> vector<512x128xf32>
    %c0_3 = arith.constant 0 : index
    %c0_4 = arith.constant 0 : index
    %3 = vector.load %arg4[%c0_3, %c0_4] : memref<1x128xf32, #tpu.memory_space<vmem>>, vector<1x128xf32>
    %4 = vector.broadcast %3 : vector<1x128xf32> to vector<512x128xf32>
    %5 = arith.mulf %2, %4 : vector<512x128xf32>
    %c0_5 = arith.constant 0 : index
    %c0_6 = arith.constant 0 : index
    %6 = vector.load %arg5[%c0_5, %c0_6] : memref<1x128xf32, #tpu.memory_space<vmem>>, vector<1x128xf32>
    %7 = vector.broadcast %6 : vector<1x128xf32> to vector<512x128xf32>
    %8 = arith.addf %5, %7 : vector<512x128xf32>
    %9 = math.absf %8 : vector<512x128xf32>
    %cst_7 = arith.constant 0.000000e+00 : f32
    %10 = vector.broadcast %cst_7 : f32 to vector<512x128xf32>
    %11 = arith.subf %10, %9 : vector<512x128xf32>
    %12 = math.exp %11 : vector<512x128xf32>
    %cst_8 = arith.constant 1.000000e+00 : f32
    %13 = vector.broadcast %cst_8 : f32 to vector<512x128xf32>
    %14 = arith.addf %13, %12 : vector<512x128xf32>
    %15 = tpu.reciprocal %14 {approx = true} : vector<512x128xf32> -> vector<512x128xf32>
    %cst_9 = arith.constant 0.000000e+00 : f32
    %16 = vector.broadcast %cst_9 : f32 to vector<512x128xf32>
    %17 = arith.cmpf oge, %8, %16 : vector<512x128xf32>
    %18 = arith.mulf %12, %15 : vector<512x128xf32>
    %19 = arith.select %17, %15, %18 : vector<512x128xi1>, vector<512x128xf32>
    %20 = arith.mulf %8, %19 : vector<512x128xf32>
    %21 = arith.truncf %20 : vector<512x128xf32> to vector<512x128xbf16>
    %c0_10 = arith.constant 0 : index
    %c0_11 = arith.constant 0 : index
    %22 = vector.load %arg6[%c0_10, %c0_11] : memref<512x128xbf16, #tpu.memory_space<vmem>>, vector<512x128xbf16>
    tpu.vector_store %arg6[%c0_10, %c0_11], %21 {strides = array<i32>} : memref<512x128xbf16, #tpu.memory_space<vmem>>, vector<512x128xbf16>,
    return
  }
  func.func @transform_0(%arg0: i32, %arg1: i32) -> (i32, i32) {
    %c0_i32 = arith.constant 0 : i32
    %c0_i32_0 = arith.constant 0 : i32
    return %arg0, %c0_i32 : i32, i32
  }
  func.func @transform_1(%arg0: i32, %arg1: i32) -> (i32, i32) {
    %c0_i32 = arith.constant 0 : i32
    %c0_i32_0 = arith.constant 0 : i32
    return %c0_i32, %arg1 : i32, i32
  }
  func.func @transform_2(%arg0: i32, %arg1: i32) -> (i32, i32) {
    %c0_i32 = arith.constant 0 : i32
    %c0_i32_0 = arith.constant 0 : i32
    return %c0_i32, %arg1 : i32, i32
  }
  func.func @transform_3(%arg0: i32, %arg1: i32) -> (i32, i32) {
    %c0_i32 = arith.constant 0 : i32
    %c0_i32_0 = arith.constant 0 : i32
    return %c0_i32, %arg1 : i32, i32
  }
  func.func @transform_4(%arg0: i32, %arg1: i32) -> (i32, i32) {
    %c0_i32 = arith.constant 0 : i32
    return %arg0, %arg1 : i32, i32
  }
}

</mosaic_0001>

<bundles_post_ra>
// kernel: tpu_custom_call.1
= control target key start
LH: loop header
LB: loop body
LE: loop exit
PB: predicated region body
PF: predicated region fallthrough
CT: control target
= control target key end

     0   :  { %s4255_s0 = inlined_call_operand.hbm [shape: bf16[2048,128], index: 0, kind: input, shape index: {}]   ;;  %s4256_s1 = inlined_call_operand.hbm [shape: bf16[128,128], index: 1, kind: input, shape index: {}]   ;;  %s4257_s2 = inlined_call_operand.vmem [shape: f32[1,128], index: 2, kind: input, shape index: {}]   ;;  %s4258_s3 = inlined_call_operand.vmem [shape: f32[1,128], index: 3, kind: input, shape index: {}]   ;;  %s4259_s4 = inlined_call_operand.hbm [shape: bf16[2048,128], index: 4, kind: output, shape index: {}]  }
   0x1   :  { %4263 = sst [smem:[#allocation11_spill]] %s4256_s1 }
   0x2   :  { %9 = vsyncpa [#allocation3], 0 }
   0x3   :  { %11 = vsyncpa [#allocation3 + $0x1], 0 }
   0x4   :  { %12 = vsyncpa [#allocation6], 0 }
   0x5   :  { %13 = vsyncpa [#allocation4], 0 }
   0x6   :  { %15 = vsyncpa [#allocation4 + $0x1], 0  ;;  %s3193_s15 = smov 0   ;;  %s3195_s16 = smov 0  }
   0x7   :  { %s3197_s17 = smov 0   ;;  %s3199_s18 = smov 0  }
   0x8   :  { %s3201_s19 = smov 0   ;;  %s3203_s20 = smov 0  }
   0x9 LB: > { %s2128_s21 = sadd.s32 4294967295, %s3159_s20   ;;  %s2129_s22 = sadd.s32 4294967294, %s3159_s20   ;;  %s3159_s20 = sphi %s3203_s20, %s21_s20   ;;  %s3155_s19 = sphi %s3201_s19, %s4282_s19   ;;  %s3151_s18 = sphi %s3199_s18, %s4281_s18   ;;  %s3147_s17 = sphi %s3197_s17, %s4280_s17   ;;  %s3143_s16 = sphi %s3195_s16, %s4279_s16   ;;  %s3139_s15 = sphi %s3193_s15, %s4278_s15  }
   0xa   : > { %p53_p0 = scmp.ne.s32.totalorder %s3143_s16, %s3139_s15  ;;  %p3227_p1 = scmp.eq.s32.totalorder %s2128_s21, 0 }
   0xb   : > { %p3231_p2 = scmp.eq.s32.totalorder %s2128_s21, 3  ;;  %p163_p3 = scmp.eq.s32.totalorder %s2129_s22, 3 }
   0xc   : > { %p3237_p4 = por %p3227_p1, %p53_p0  ;;  %p2130_p5 = scmp.ge.s32.totalorder %s3159_s20, 1 }
   0xd   : > { %p3242_p6 = por %p163_p3, %p53_p0  ;;  %p170_p7 = scmp.lt.s32.totalorder %s3159_s20, 5 }
   0xe   : > { %s3161_s28 = smov [#allocation5]   ;;  %s33_s5 = sadd.s32 1, %s3155_s19 }
   0xf   : > { %s4267_s26 = scalar_select %p3242_p6, 1, 0 }
  0x10   : > { %p3247_p8 = pnand %p2130_p5, %p170_p7  ;;  %s184_s29 = sshll.u32 %s3161_s28, 4  ;;  %s185_s29 = int_to_ptr.vmem [resolvable:$true] %s184_s29 }
  0x11   : > { %s3032_s6 = scalar_lea.vmem %s185_s29, 1024  ;;  %p3040_p3 = scmp.lt.s32.totalorder %s185_s29, %s185_s29 }
  0x12   : > { %p2654_p9 = pneg %p3247_p8  ;;  %p3033_p12 = scmp.ne.s32.totalorder %s185_s29, %s3032_s6 }
  0x13   : > { %p3041_p5 = scmp.lt.s32.totalorder %s3032_s6, %s3032_s6 }
  0x14   : > { %p3255_p10 = pnand %p2654_p9, %p3227_p1 }
  0x15   : > { %p3042_p7 = por %p3041_p5, %p3040_p3 }
  0x16   : > { %p3023_p11 = pneg %p3255_p10 }
  0x18   : > { %p3035_p13 = pnand %p3033_p12, %p3023_p11 }
  0x1a   : > { %p3036_p0 = pneg %p3035_p13 }
  0x1c   : > { %p3043_p6 = pnand %p3042_p7, %p3036_p0 }
  0x1e   : > { %3046 = shalt.err (!%p3043_p6)
}
  0x1f   : > { %s4260_s7 = smov 64   ;;  %s4261_s8 = smov 4  }
  0x20   : > { %s4270_s1 = sld [smem:[#allocation11_spill]]  ;;  %p35_p6 = scmp.ge.s32.totalorder %s33_s5, 4 }
  0x21   : > { %s40_s11 = sadd.s32 1, %s3147_s17  ;;  %p47_p9 = scmp.ne.s32.totalorder %s3147_s17, %s3143_s16 }
  0x22   : > { %p48_p11 = scmp.eq.s32.totalorder %s3159_s20, 0  ;;  %s4284_s5 = smov (%p35_p6, %s33_s5), 0 }
  0x23   : > { %p3282_p13 = por %p3231_p2, %p47_p9  ;;  %s37_s14 = ssub.s32 %s3155_s19, %s4284_s5 }
  0x24   : > { %p3276_p12 = por %p48_p11, %p47_p9  ;;  %p2667_p0 = scmp.lt.s32.totalorder %s3159_s20, 4 }
  0x25   : > { %s4272_s13 = scalar_select %p3282_p13, 1, 0 }
  0x26   : > { %2657 = dma.hbm_to_vmem [thread:$0]  (!%p3255_p10), %s4270_s1, 1024, %s185_s29, [#allocation6], %s4260_s7, %s4260_s7, %s4261_s8  }
  0x27   : > { %p38_p10 = scmp.eq.s32.totalorder %s37_s14, 0  ;;  %s210_s21 = sand.u32 1, %s3147_s17  }
  0x28   : > { %s2135_s22 = sshll.u32 %s210_s21, 8  ;;  %s2253_s29 = sshll.u32 %s3155_s19, 12 }
  0x29   : > { %s3291_s28 = scalar_select %p38_p10, %s3147_s17, %s40_s11  }
  0x2a   : > { %s220_s9 = scalar_lea.hbm %s4255_s0, %s2253_s29  ;;  %s214_s10 = scalar_lea.vmem [#allocation2], %s2135_s22 }
  0x2b   : > { %s221_s7 = sshll.u32 %s214_s10, 4  ;;  %p3299_p2 = pnand %p2667_p0, %p3276_p12  ;;  %s222_s7 = int_to_ptr.vmem [resolvable:$true] %s221_s7 }
  0x2c   : > { %s211_s8 = scalar_lea.sflag [#allocation3], %s210_s21  ;;  %s3060_s14 = scalar_lea.vmem %s222_s7, 4096 }
  0x2d   : > { %p3049_p3 = pneg %p3299_p2  ;;  %p3061_p5 = scmp.ne.s32.totalorder %s222_s7, %s3060_s14 }
  0x2e   : > { %s3164_s11 = smov [#allocation2]  }
  0x2f   : > { %p3063_p7 = pnand %p3061_p5, %p3049_p3  ;;  %s3065_s1 = sshll.u32 %s3164_s11, 4  ;;  %s3066_s1 = int_to_ptr.vmem [resolvable:$false] %s3065_s1 }
  0x30   : > { %s3067_s29 = scalar_lea.vmem %s3066_s1, 8192  ;;  %p3068_p9 = scmp.lt.s32.totalorder %s222_s7, %s3066_s1 }
  0x31   : > { %p3064_p6 = pneg %p3063_p7  ;;  %p3069_p11 = scmp.lt.s32.totalorder %s3067_s29, %s3060_s14 }
  0x33   : > { %p3070_p10 = por %p3069_p11, %p3068_p9 }
  0x35   : > { %p3071_p13 = pnand %p3070_p10, %p3064_p6 }
  0x37   : > { %3074 = shalt.err (!%p3071_p13)
}
  0x38   : > { %s4274_s12 = smov 4   ;;  %s4275_s22 = smov 64  }
  0x39   : > { %2661 = dma.hbm_to_vmem [thread:$0]  (!%p3299_p2), %s220_s9, 4096, %s222_s7, %s211_s8, %s4275_s22, %s4275_s22, %s4274_s12  }
  0x3a   : > { %233 = sbr.rel (%p3247_p8) target bundleno = 529 (0x211), region = 36  ;;  %s3313_s21 = sand.u32 (!%p3247_p8), 1, %s3143_s16  }
  0x3b   : > { %s2139_s1 = sshll.u32 (!%p3247_p8), %s3313_s21, 8  ;;  %s236_s30 = scalar_lea.sflag (!%p3247_p8), [#allocation3], %s3313_s21 }
  0x3c   : > { %s3319_s6 = scalar_lea.vmem (!%p3247_p8), [#allocation2], %s2139_s1 }
  0x3f   : > { %3126 = dma.done.wait (%p3237_p4), %s236_s30, 4096  }
  0x40   : > { %3128 = vsyncadd (%p3237_p4), %s236_s30, 4294963200 }
  0x41   : > { %3130 = dma.done.wait (%p3227_p1), [#allocation6], 1024  }
  0x42   : > { %3132 = vsyncadd (%p3227_p1), [#allocation6], 4294966272  ;;  %v2723_v0 = vld [vmem:[#allocation5 + $0x38] sm:$0xff]   ;;  %v2724_v1 = vld [vmem:[#allocation5 + $0x30] sm:$0xff]   ;;  %s3567_s8 = scalar_lea.vmem [#allocation7], %s2139_s1  ;;  %s2318_s11 = sshll.u32 %s3151_s18, 12 }
  0x43   : > { %2550 = vmatprep.subr.bf16.mxu0 %v2723_v0  ;;  %2630 = vmatprep.subr.bf16.mxu1 %v2723_v0  ;;  %v2725_v2 = vld [vmem:[#allocation5 + $0x28] sm:$0xff]   ;;  %v2726_v3 = vld [vmem:[#allocation5 + $0x20] sm:$0xff]   ;;  %v2727_v6 = vld [vmem:[#allocation5 + $0x18] sm:$0xff]   ;;  %s2009_s29 = sshll.u32 %s3567_s8, 4  ;;  %s4204_s1 = scalar_lea.hbm %s4259_s4, %s2318_s11  ;;  %s4206_s29 = int_to_ptr.vmem [resolvable:$true] %s2009_s29 }
  0x44   : > { %2551 = vmatpush3.bf16.msra.mxu0 %v2723_v0  ;;  %2638 = vmatpush3.bf16.msra.mxu1 %v2723_v0  ;;  %v2731_v4 = vld [vmem:[%s3319_s6] sm:$0xff]   ;;  %v2728_v7 = vld [vmem:[#allocation5 + $0x10] sm:$0xff]   ;;  %v2729_v8 = vld [vmem:[#allocation5 + $0x8] sm:$0xff]   ;;  %s1995_s18 = scalar_lea.sflag [#allocation4], %s3313_s21  ;;  %s3075_s30 = scalar_lea.vmem %s4206_s29, 4096 }
  0x45   : > { %2552 = vmatprep.subr.bf16.mxu0 %v2724_v1  ;;  %2631 = vmatprep.subr.bf16.mxu1 %v2724_v1  ;;  %v2732_v5 = vld [vmem:[%s3319_s6 + $0x80] sm:$0xff]   ;;  %v2733_v10 = vld [vmem:[%s3319_s6 + $0x8] sm:$0xff]   ;;  %v2735_v12 = vld [vmem:[%s3319_s6 + $0x10] sm:$0xff]   ;;  %p3076_p1 = scmp.ne.s32.totalorder %s4206_s29, %s3075_s30  ;;  %p4276_p4 = scmp.ne.s32.totalorder %s4272_s13, 0 }
  0x46   : > { %2566 = vmatprep.mubr.bf16.mxu0 %v2731_v4  ;;  %2598 = vmatprep.mubr.bf16.mxu1 %v2732_v5  ;;  %v2730_v9 = vld [vmem:[#allocation5] sm:$0xff]   ;;  %v2734_v11 = vld [vmem:[%s3319_s6 + $0x88] sm:$0xff]   ;;  %v2736_v13 = vld [vmem:[%s3319_s6 + $0x90] sm:$0xff]  }
  0x47   : > { %v2737_v14 = vld [vmem:[%s3319_s6 + $0x18] sm:$0xff]   ;;  %v2739_v16 = vld [vmem:[%s3319_s6 + $0x20] sm:$0xff]   ;;  %v2741_v18 = vld [vmem:[%s3319_s6 + $0x28] sm:$0xff]   ;;  %p3077_p8 = pnand %p3076_p1, %p4276_p4 }
  0x48   : > { %2553 = vmatpush3.bf16.msra.mxu0 %v2724_v1  ;;  %2639 = vmatpush3.bf16.msra.mxu1 %v2724_v1  ;;  %v2738_v15 = vld [vmem:[%s3319_s6 + $0x98] sm:$0xff]   ;;  %v2740_v17 = vld [vmem:[%s3319_s6 + $0xa0] sm:$0xff]   ;;  %v2742_v19 = vld [vmem:[%s3319_s6 + $0xa8] sm:$0xff]  }
  0x49   : > { %2554 = vmatprep.subr.bf16.mxu0 %v2725_v2  ;;  %2632 = vmatprep.subr.bf16.mxu1 %v2725_v2  ;;  %v2743_v20 = vld [vmem:[%s3319_s6 + $0x30] sm:$0xff]   ;;  %v2745_v22 = vld [vmem:[%s3319_s6 + $0x38] sm:$0xff]   ;;  %v2747_v24 = vld [vmem:[%s3319_s6 + $0x40] sm:$0xff]   ;;  %p3078_p12 = pneg %p3077_p8 }
  0x4a   : > { %v2744_v21 = vld [vmem:[%s3319_s6 + $0xb0] sm:$0xff]   ;;  %v2746_v23 = vld [vmem:[%s3319_s6 + $0xb8] sm:$0xff]   ;;  %v2748_v25 = vld [vmem:[%s3319_s6 + $0xc0] sm:$0xff]  }
  0x4b   : > { %v2749_v26 = vld [vmem:[%s3319_s6 + $0x48] sm:$0xff]   ;;  %v2751_v28 = vld [vmem:[%s3319_s6 + $0x50] sm:$0xff]   ;;  %v2753_v30 = vld [vmem:[%s3319_s6 + $0x58] sm:$0xff]  }
  0x4c   : > { %2555 = vmatpush3.bf16.msra.mxu0 %v2725_v2  ;;  %2640 = vmatpush3.bf16.msra.mxu1 %v2725_v2  ;;  %v2750_v27 = vld [vmem:[%s3319_s6 + $0xc8] sm:$0xff]   ;;  %v2752_v29 = vld [vmem:[%s3319_s6 + $0xd0] sm:$0xff]   ;;  %v2754_v31 = vld [vmem:[%s3319_s6 + $0xd8] sm:$0xff]  }
  0x4d   : > { %2556 = vmatprep.subr.bf16.mxu0 %v2726_v3  ;;  %2633 = vmatprep.subr.bf16.mxu1 %v2726_v3  ;;  %v2755_v32 = vld [vmem:[%s3319_s6 + $0x60] sm:$0xff]   ;;  %v2757_v34 = vld [vmem:[%s3319_s6 + $0x68] sm:$0xff]   ;;  %v2759_v36 = vld [vmem:[%s3319_s6 + $0x70] sm:$0xff]  }
  0x4e   : > { %v2756_v33 = vld [vmem:[%s3319_s6 + $0xe0] sm:$0xff]   ;;  %v2758_v35 = vld [vmem:[%s3319_s6 + $0xe8] sm:$0xff]   ;;  %v2760_v37 = vld [vmem:[%s3319_s6 + $0xf0] sm:$0xff]  }
  0x4f   : > { %v2761_v38 = vld [vmem:[%s3319_s6 + $0x78] sm:$0xff]   ;;  %v3364_v40 = vld [vmem:[%s4257_s2] ss:$0 sm:$0xff] }
  0x50   : > { %2557 = vmatpush3.bf16.msra.mxu0 %v2726_v3  ;;  %2641 = vmatpush3.bf16.msra.mxu1 %v2726_v3  ;;  %v2762_v39 = vld [vmem:[%s3319_s6 + $0xf8] sm:$0xff]   ;;  %v3369_v42 = vld [vmem:[%s4258_s3] ss:$0 sm:$0xff]  ;;  %s3165_s6 = smov [#allocation7]  }
  0x51   : > { %2558 = vmatprep.subr.bf16.mxu0 %v2727_v6  ;;  %2634 = vmatprep.subr.bf16.mxu1 %v2727_v6  ;;  %s3079_s23 = sshll.u32 %s3165_s6, 4  ;;  %s3080_s23 = int_to_ptr.vmem [resolvable:$false] %s3079_s23 }
  0x52   : > { %s3081_s25 = scalar_lea.vmem %s3080_s23, 8192  ;;  %p3082_p13 = scmp.lt.s32.totalorder %s4206_s29, %s3080_s23 }
  0x53   : > { %p3083_p0 = scmp.lt.s32.totalorder %s3081_s25, %s3075_s30 }
  0x54   : > { %2559 = vmatpush3.bf16.msra.mxu0 %v2727_v6  ;;  %2642 = vmatpush3.bf16.msra.mxu1 %v2727_v6 }
  0x55   : > { %2560 = vmatprep.subr.bf16.mxu0 %v2728_v7  ;;  %2635 = vmatprep.subr.bf16.mxu1 %v2728_v7  ;;  %p3084_p2 = por %p3083_p0, %p3082_p13 }
  0x57   : > { %p3085_p3 = pnand %p3084_p2, %p3078_p12 }
  0x58   : > { %2561 = vmatpush3.bf16.msra.mxu0 %v2728_v7  ;;  %2643 = vmatpush3.bf16.msra.mxu1 %v2728_v7 }
  0x59   : > { %2562 = vmatprep.subr.bf16.mxu0 %v2729_v8  ;;  %2636 = vmatprep.subr.bf16.mxu1 %v2729_v8 }
  0x5c   : > { %2563 = vmatpush3.bf16.msra.mxu0 %v2729_v8  ;;  %2644 = vmatpush3.bf16.msra.mxu1 %v2729_v8 }
  0x5d   : > { %2564 = vmatprep.subr.bf16.mxu0 %v2730_v9  ;;  %2637 = vmatprep.subr.bf16.mxu1 %v2730_v9 }
  0x60   : > { %2565 = vmatpush3.bf16.msra.mxu0 %v2730_v9  ;;  %2645 = vmatpush3.bf16.msra.mxu1 %v2730_v9 }
  0x63   : > { %2567 = vmatmul.mubr.bf16.vlgmr.msra.gmra.mxu0 %v2733_v10  ;;  %2599 = vmatmul.mubr.bf16.vlgmr.msra.gmra.mxu1 %v2734_v11 }
  0x64   : > { %2570 = vmatprep.mubr.bf16.mxu0 %v2735_v12  ;;  %2602 = vmatprep.mubr.bf16.mxu1 %v2736_v13 }
  0x6b   : > { %2571 = vmatmul.mubr.bf16.gmra.mxu0 %v2737_v14  ;;  %2603 = vmatmul.mubr.bf16.gmra.mxu1 %v2738_v15 }
  0x6c   : > { %2574 = vmatprep.mubr.bf16.mxu0 %v2739_v16  ;;  %2606 = vmatprep.mubr.bf16.mxu1 %v2740_v17 }
  0x73   : > { %2575 = vmatmul.mubr.bf16.gmra.mxu0 %v2741_v18  ;;  %2607 = vmatmul.mubr.bf16.gmra.mxu1 %v2742_v19 }
  0x74   : > { %2578 = vmatprep.mubr.bf16.mxu0 %v2743_v20  ;;  %2610 = vmatprep.mubr.bf16.mxu1 %v2744_v21 }
  0x7b   : > { %2579 = vmatmul.mubr.bf16.gmra.mxu0 %v2745_v22  ;;  %2611 = vmatmul.mubr.bf16.gmra.mxu1 %v2746_v23 }
  0x7c   : > { %2582 = vmatprep.mubr.bf16.mxu0 %v2747_v24  ;;  %2614 = vmatprep.mubr.bf16.mxu1 %v2748_v25 }
  0x83   : > { %2583 = vmatmul.mubr.bf16.gmra.mxu0 %v2749_v26  ;;  %2615 = vmatmul.mubr.bf16.gmra.mxu1 %v2750_v27 }
  0x84   : > { %2586 = vmatprep.mubr.bf16.mxu0 %v2751_v28  ;;  %2618 = vmatprep.mubr.bf16.mxu1 %v2752_v29 }
  0x8b   : > { %2587 = vmatmul.mubr.bf16.gmra.mxu0 %v2753_v30  ;;  %2619 = vmatmul.mubr.bf16.gmra.mxu1 %v2754_v31 }
  0x8c   : > { %2590 = vmatprep.mubr.bf16.mxu0 %v2755_v32  ;;  %2622 = vmatprep.mubr.bf16.mxu1 %v2756_v33 }
  0x93   : > { %2591 = vmatmul.mubr.bf16.gmra.mxu0 %v2757_v34  ;;  %2623 = vmatmul.mubr.bf16.gmra.mxu1 %v2758_v35 }
  0x94   : > { %2594 = vmatprep.mubr.bf16.mxu0 %v2759_v36  ;;  %2626 = vmatprep.mubr.bf16.mxu1 %v2760_v37 }
  0x9b   : > { %2595 = vmatmul.mubr.bf16.gmra.mxu0 %v2761_v38  ;;  %2627 = vmatmul.mubr.bf16.gmra.mxu1 %v2762_v39 }
 0x123   : > { %v2568_v41 = vpop.f32.mrf.mxu0  ;;  %v2600_v43 = vpop.f32.mrf.mxu1 }
 0x124   : > { %v901_v44 = vmul.f32 %v2568_v41, %v3364_v40  ;;  %v933_v45 = vmul.f32 %v2600_v43, %v3364_v40 }
 0x125   : > { %v637_v46 = vpop.f32.mrf.mxu0  ;;  %v765_v47 = vpop.f32.mrf.mxu1 }
 0x126   : > { %v3374_v48 = vadd.f32 %v3369_v42, %v901_v44  ;;  %v3377_v49 = vadd.f32 %v3369_v42, %v933_v45  ;;  %v899_v50 = vmul.f32 %v3364_v40, %v637_v46  ;;  %v931_v51 = vmul.f32 %v3364_v40, %v765_v47 }
 0x127   : > { %v2569_v52 = vpop.f32.mrf.mxu0  ;;  %v2601_v53 = vpop.f32.mrf.mxu1 }
 0x128   : > { %v1036_v54 = vand.u32 2147483647, %v3374_v48  ;;  %v1068_v55 = vand.u32 2147483647, %v3377_v49  ;;  %v3384_v56 = vadd.f32 %v3369_v42, %v899_v50  ;;  %v3387_v57 = vadd.f32 %v3369_v42, %v931_v51 }
 0x129   : > { %v902_v58 = vmul.f32 %v2569_v52, %v3364_v40  ;;  %v934_v59 = vmul.f32 %v2601_v53, %v3364_v40  ;;  %v640_v60 = vpop.f32.mrf.mxu0  ;;  %v768_v61 = vpop.f32.mrf.mxu1  ;;  %vm1420_vm0 = vcmp.ge.f32.partialorder %v3374_v48, 0.0  ;;  %vm1452_vm1 = vcmp.ge.f32.partialorder %v3377_v49, 0.0 }
 0x12a   : > { %v1100_v62 = vsub.f32 0.0, %v1036_v54  ;;  %v1132_v63 = vsub.f32 0.0, %v1068_v55  ;;  %v900_v0 = vmul.f32 %v3364_v40, %v640_v60  ;;  %v932_v1 = vmul.f32 %v3364_v40, %v768_v61 }
 0x12b   : > { %v1034_v2 = vand.u32 2147483647, %v3384_v56  ;;  %v1066_v3 = vand.u32 2147483647, %v3387_v57  ;;  %v2572_v4 = vpop.f32.mrf.mxu0  ;;  %v3396_v7 = vadd.f32 %v3369_v42, %v902_v58  ;;  %v3399_v8 = vadd.f32 %v3369_v42, %v934_v59  ;;  %v2604_v9 = vpop.f32.mrf.mxu1 }
 0x12c   : > { %v1166_v5 = vmul.f32 1.442695, %v1100_v62  ;;  %v1230_v6 = vmul.f32 1.442695, %v1132_v63  ;;  %v3402_v12 = vadd.f32 %v3369_v42, %v900_v0  ;;  %v3405_v13 = vadd.f32 %v3369_v42, %v932_v1 }
 0x12d   : > { %v1098_v10 = vsub.f32 0.0, %v1034_v2  ;;  %v1130_v11 = vsub.f32 0.0, %v1066_v3  ;;  %v1037_v14 = vand.u32 2147483647, %v3396_v7  ;;  %v1069_v15 = vand.u32 2147483647, %v3399_v8  ;;  %v653_v16 = vpop.f32.mrf.mxu0  ;;  %v781_v22 = vpop.f32.mrf.mxu1 }
 0x12e   : > { %2763 = vpow2.f32 %v1166_v5  ;;  %v1035_v21 = vand.u32 2147483647, %v3402_v12  ;;  %v1067_v23 = vand.u32 2147483647, %v3405_v13  ;;  %v905_v24 = vmul.f32 %v2572_v4, %v3364_v40 }
 0x12f   : > { %2765 = vpow2.f32 %v1230_v6  ;;  %v1162_v17 = vmul.f32 1.442695, %v1098_v10  ;;  %v1226_v18 = vmul.f32 1.442695, %v1130_v11  ;;  %v1101_v19 = vsub.f32 0.0, %v1037_v14  ;;  %v2573_v28 = vpop.f32.mrf.mxu0  ;;  %v2605_v35 = vpop.f32.mrf.mxu1 }
 0x130   : > { %v1133_v20 = vsub.f32 0.0, %v1069_v15  ;;  %v1099_v27 = vsub.f32 0.0, %v1035_v21  ;;  %v1131_v29 = vsub.f32 0.0, %v1067_v23  ;;  %v3413_v30 = vadd.f32 %v3369_v42, %v905_v24 }
 0x131   : > { %2767 = vpow2.f32 %v1162_v17  ;;  %v1168_v25 = vmul.f32 1.442695, %v1101_v19  ;;  %v937_v31 = vmul.f32 %v2604_v9, %v3364_v40  ;;  %v903_v32 = vmul.f32 %v3364_v40, %v653_v16  ;;  %v656_v50 = vpop.f32.mrf.mxu0  ;;  %v784_v51 = vpop.f32.mrf.mxu1 }
 0x132   : > { %2769 = vpow2.f32 %v1226_v18  ;;  %v1232_v26 = vmul.f32 1.442695, %v1133_v20  ;;  %v1164_v33 = vmul.f32 1.442695, %v1099_v27  ;;  %v935_v34 = vmul.f32 %v3364_v40, %v781_v22 }
 0x133   : > { %2771 = vpow2.f32 %v1168_v25  ;;  %v1228_v36 = vmul.f32 1.442695, %v1131_v29  ;;  %v1040_v37 = vand.u32 2147483647, %v3413_v30  ;;  %v906_v38 = vmul.f32 %v2573_v28, %v3364_v40  ;;  %v2576_v2 = vpop.f32.mrf.mxu0  ;;  %v2608_v20 = vpop.f32.mrf.mxu1 }
 0x134   : > { %2773 = vpow2.f32 %v1232_v26  ;;  %v3421_v39 = vadd.f32 %v3369_v42, %v937_v31  ;;  %v3424_v41 = vadd.f32 %v3369_v42, %v903_v32  ;;  %v3427_v43 = vadd.f32 %v3369_v42, %v935_v34 }
 0x135   : > { %2775 = vpow2.f32 %v1164_v33  ;;  %v1104_v44 = vsub.f32 0.0, %v1040_v37  ;;  %v938_v45 = vmul.f32 %v2605_v35, %v3364_v40  ;;  %v3433_v53 = vadd.f32 %v3369_v42, %v906_v38  ;;  %v669_v21 = vpop.f32.mrf.mxu0 }
 0x136   : > { %2777 = vpow2.f32 %v1228_v36  ;;  %v1072_v46 = vand.u32 2147483647, %v3421_v39  ;;  %v1038_v47 = vand.u32 2147483647, %v3424_v41  ;;  %v1070_v55 = vand.u32 2147483647, %v3427_v43 }
 0x137   : > { %v1174_v52 = vmul.f32 1.442695, %v1104_v44  ;;  %v3437_v58 = vadd.f32 %v3369_v42, %v938_v45  ;;  %v904_v61 = vmul.f32 %v3364_v40, %v656_v50  ;;  %v936_v62 = vmul.f32 %v3364_v40, %v784_v51  ;;  %v797_v44 = vpop.f32.mrf.mxu1  ;;  %v2577_v45 = vpop.f32.mrf.mxu0 }
 0x138   : > { %v1136_v54 = vsub.f32 0.0, %v1072_v46  ;;  %v1102_v60 = vsub.f32 0.0, %v1038_v47  ;;  %v1041_v4 = vand.u32 2147483647, %v3433_v53  ;;  %v1134_v9 = vsub.f32 0.0, %v1070_v55 }
 0x139   : > { %2779 = vpow2.f32 %v1174_v52  ;;  %v1073_v5 = vand.u32 2147483647, %v3437_v58  ;;  %v3452_v10 = vadd.f32 %v3369_v42, %v904_v61  ;;  %v3455_v11 = vadd.f32 %v3369_v42, %v936_v62 }
 0x13a   : > { %v1238_v1 = vmul.f32 1.442695, %v1136_v54  ;;  %v1170_v16 = vmul.f32 1.442695, %v1102_v60  ;;  %v909_v17 = vmul.f32 %v2576_v2, %v3364_v40  ;;  %v1105_v23 = vsub.f32 0.0, %v1041_v4  ;;  %v2609_v2 = vpop.f32.mrf.mxu1 }
 0x13b   : > { %v3439_v59 = vpop.eup %2763  ;;  %v1039_v19 = vand.u32 2147483647, %v3452_v10  ;;  %v1137_v24 = vsub.f32 0.0, %v1073_v5  ;;  %v1071_v25 = vand.u32 2147483647, %v3455_v11  ;;  %v941_v34 = vmul.f32 %v2608_v20, %v3364_v40 }
 0x13c   : > { %v3443_v63 = vpop.eup %2765  ;;  %v1292_v0 = vadd.f32 1.0, %v3439_v59  ;;  %v1234_v28 = vmul.f32 1.442695, %v1134_v9  ;;  %v3470_v29 = vadd.f32 %v3369_v42, %v909_v17  ;;  %v1176_v47 = vmul.f32 1.442695, %v1105_v23 }
 0x13d   : > { %v1324_v3 = vadd.f32 1.0, %v3443_v63  ;;  %v1103_v33 = vsub.f32 0.0, %v1039_v19  ;;  %v1135_v37 = vsub.f32 0.0, %v1071_v25  ;;  %v1240_v50 = vmul.f32 1.442695, %v1137_v24 }
 0x13e   : > { %v3449_v6 = vpop.eup %2767  ;;  %2781 = vrcp.f32 %v1292_v0  ;;  %v1044_v38 = vand.u32 2147483647, %v3470_v29  ;;  %v3483_v52 = vadd.f32 %v3369_v42, %v941_v34  ;;  %v907_v54 = vmul.f32 %v3364_v40, %v669_v21 }
 0x13f   : > { %v3457_v14 = vpop.eup %2769  ;;  %2783 = vrcp.f32 %v1324_v3  ;;  %v1290_v15 = vadd.f32 1.0, %v3449_v6  ;;  %v939_v55 = vmul.f32 %v3364_v40, %v797_v44  ;;  %v910_v60 = vmul.f32 %v2577_v45, %v3364_v40 }
 0x140   : > { %v1322_v18 = vadd.f32 1.0, %v3457_v14  ;;  %2785 = vpow2.f32 %v1238_v1  ;;  %v3463_v22 = vpop.eup %2771  ;;  %v1108_v51 = vsub.f32 0.0, %v1044_v38  ;;  %vm1418_vm2 = vcmp.ge.f32.partialorder %v3384_v56, 0.0 }
 0x141   : > { %2787 = vrcp.f32 %v1290_v15  ;;  %v3466_v26 = vpop.eup %2773  ;;  %v1293_v27 = vadd.f32 1.0, %v3463_v22  ;;  %v1172_v62 = vmul.f32 1.442695, %v1103_v33  ;;  %v1236_v0 = vmul.f32 1.442695, %v1135_v37 }
 0x142   : > { %2789 = vrcp.f32 %v1322_v18  ;;  %v3472_v31 = vpop.eup %2775  ;;  %v1325_v32 = vadd.f32 1.0, %v3466_v26  ;;  %v1076_v1 = vand.u32 2147483647, %v3483_v52  ;;  %vm1450_vm3 = vcmp.ge.f32.partialorder %v3387_v57, 0.0 }
 0x143   : > { %2791 = vpow2.f32 %v1170_v16  ;;  %v3476_v35 = vpop.eup %2777  ;;  %v1291_v36 = vadd.f32 1.0, %v3472_v31  ;;  %v3496_v4 = vadd.f32 %v3369_v42, %v907_v54  ;;  %v3499_v5 = vadd.f32 %v3369_v42, %v939_v55 }
 0x144   : > { %2793 = vrcp.f32 %v1293_v27  ;;  %v1323_v46 = vadd.f32 1.0, %v3476_v35  ;;  %v1182_v9 = vmul.f32 1.442695, %v1108_v51  ;;  %v1140_v15 = vsub.f32 0.0, %v1076_v1 }
 0x145   : > { %2795 = vrcp.f32 %v1325_v32  ;;  %v3502_v16 = vadd.f32 %v3369_v42, %v910_v60  ;;  %vm1421_vm4 = vcmp.ge.f32.partialorder %v3396_v7, 0.0  ;;  %v1042_v18 = vand.u32 2147483647, %v3496_v4 }
 0x146   : > { %2797 = vrcp.f32 %v1291_v36  ;;  %v3489_v61 = vpop.eup %2779  ;;  %v1074_v19 = vand.u32 2147483647, %v3499_v5  ;;  %v942_v20 = vmul.f32 %v2609_v2, %v3364_v40  ;;  %vm1453_vm5 = vcmp.ge.f32.partialorder %v3399_v8, 0.0 }
 0x147   : > { %2799 = vrcp.f32 %v1323_v46  ;;  %v1296_v3 = vadd.f32 1.0, %v3489_v61  ;;  %v1246_v24 = vmul.f32 1.442695, %v1140_v15  ;;  %vm1419_vm6 = vcmp.ge.f32.partialorder %v3402_v12, 0.0 }
 0x148   : > { %2801 = vpow2.f32 %v1234_v28  ;;  %v1106_v28 = vsub.f32 0.0, %v1042_v18  ;;  %v1138_v32 = vsub.f32 0.0, %v1074_v19  ;;  %vm1451_vm7 = vcmp.ge.f32.partialorder %v3405_v13, 0.0 }
 0x149   : > { %2803 = vpow2.f32 %v1176_v47  ;;  %v1045_v36 = vand.u32 2147483647, %v3502_v16  ;;  %v3523_v44 = vadd.f32 %v3369_v42, %v942_v20  ;;  %vm1424_vm8 = vcmp.ge.f32.partialorder %v3413_v30, 0.0 }
 0x14a   : > { %2805 = vpow2.f32 %v1240_v50  ;;  %v1178_v50 = vmul.f32 1.442695, %v1106_v28  ;;  %v1242_v60 = vmul.f32 1.442695, %v1138_v32  ;;  %vm1456_vm9 = vcmp.ge.f32.partialorder %v3421_v39, 0.0 }
 0x14b   : > { %v2782_v17 = vpop.eup %2781  ;;  %2807 = vrcp.f32 %v1296_v3  ;;  %vm1422_vm10 = vcmp.ge.f32.partialorder %v3424_v41, 0.0  ;;  %vm1454_vm11 = vcmp.ge.f32.partialorder %v3427_v43, 0.0  ;;  %vm1425_vm12 = vcmp.ge.f32.partialorder %v3433_v53, 0.0 }
 0x14c   : > { %v2784_v21 = vpop.eup %2783  ;;  %v1484_v23 = vmul.f32 %v2782_v17, %v3439_v59  ;;  %2809 = vpow2.f32 %v1172_v62  ;;  %vm1457_vm13 = vcmp.ge.f32.partialorder %v3437_v58, 0.0  ;;  %vm1423_vm14 = vcmp.ge.f32.partialorder %v3452_v10, 0.0 }
 0x14d   : > { %v3510_v25 = vpop.eup %2785  ;;  %v1516_v27 = vmul.f32 %v2784_v21, %v3443_v63  ;;  %2811 = vpow2.f32 %v1236_v0  ;;  %vm1455_vm15 = vcmp.ge.f32.partialorder %v3455_v11, 0.0 }
 0x14e   : > { %v2788_v33 = vpop.eup %2787  ;;  %v1548_v34 = vsel %vm1420_vm0, %v2782_v17, %v1484_v23  ;;  %v1328_v59 = vadd.f32 1.0, %v3510_v25  ;;  %2813 = vpow2.f32 %v1182_v9  ;;  %v1077_v23 = vand.u32 2147483647, %v3523_v44 }
 0x14f   : > { %v2790_v37 = vpop.eup %2789  ;;  %v1580_v63 = vsel %vm1452_vm1, %v2784_v21, %v1516_v27  ;;  %v1482_v38 = vmul.f32 %v2788_v33, %v3449_v6  ;;  %2815 = vpow2.f32 %v1246_v24  ;;  %v1612_v46 = vmul.f32 %v1548_v34, %v3374_v48  ;;  %v672_v24 = vpop.f32.mrf.mxu0 }
 0x150   : > { %v3525_v45 = vpop.eup %2791  ;;  %v1514_v47 = vmul.f32 %v2790_v37, %v3457_v14  ;;  %2817 = vrcp.f32 %v1328_v59  ;;  %v1109_v6 = vsub.f32 0.0, %v1045_v36  ;;  %v1644_v0 = vmul.f32 %v1580_v63, %v3377_v49  ;;  %v800_v63 = vpop.f32.mrf.mxu1 }
 0x151   : > { %v2794_v51 = vpop.eup %2793  ;;  %v1546_v54 = vsel %vm1418_vm2, %v2788_v33, %v1482_v38  ;;  %v1294_v55 = vadd.f32 1.0, %v3525_v45  ;;  %2819 = vpow2.f32 %v1178_v50  ;;  %vm1428_vm0 = vcmp.ge.f32.partialorder %v3470_v29, 0.0 }
 0x152   : > { %v2796_v62 = vpop.eup %2795  ;;  %v1578_v1 = vsel %vm1450_vm3, %v2790_v37, %v1514_v47  ;;  %v1485_v48 = vmul.f32 %v2794_v51, %v3463_v22  ;;  %v1610_v2 = vmul.f32 %v1546_v54, %v3384_v56  ;;  %v1184_v9 = vmul.f32 1.442695, %v1109_v6  ;;  %v2580_v47 = vpop.f32.mrf.mxu0 }
 0x153   : > { %v2798_v14 = vpop.eup %2797  ;;  %v1517_v3 = vmul.f32 %v2796_v62, %v3466_v26  ;;  %2821 = vrcp.f32 %v1294_v55  ;;  %v1642_v17 = vmul.f32 %v1578_v1, %v3387_v57  ;;  %v1141_v37 = vsub.f32 0.0, %v1077_v23 }
 0x154   : > { %v2800_v15 = vpop.eup %2799  ;;  %v1549_v18 = vsel %vm1421_vm4, %v2794_v51, %v1485_v48  ;;  %v1483_v49 = vmul.f32 %v2798_v14, %v3472_v31  ;;  %2823 = vpow2.f32 %v1242_v60  ;;  %v908_v54 = vmul.f32 %v3364_v40, %v672_v24 }
 0x155   : > { %v3542_v19 = vpop.eup %2801  ;;  %v1613_v22 = vmul.f32 %v1549_v18, %v3396_v7  ;;  %v1581_v56 = vsel %vm1453_vm5, %v2796_v62, %v1517_v3  ;;  %v1515_v26 = vmul.f32 %v2800_v15, %v3476_v35  ;;  %2825 = vpow2.f32 %v1184_v9  ;;  %v2612_v9 = vpop.f32.mrf.mxu1 }
 0x156   : > { %v3548_v20 = vpop.eup %2803  ;;  %v1645_v57 = vmul.f32 %v1581_v56, %v3399_v8  ;;  %v1547_v21 = vsel %vm1419_vm6, %v2798_v14, %v1483_v49  ;;  %v1326_v31 = vadd.f32 1.0, %v3542_v19  ;;  %v1248_v6 = vmul.f32 1.442695, %v1141_v37 }
 0x157   : > { %v3555_v7 = vpop.eup %2805  ;;  %v2327_v27 = vpack.c.bf16 %v1613_v22, %v1612_v46  ;;  %v1611_v28 = vmul.f32 %v1547_v21, %v3402_v12  ;;  %v1579_v35 = vsel %vm1451_vm7, %v2800_v15, %v1515_v26  ;;  %v1297_v32 = vadd.f32 1.0, %v3548_v20 }
 0x158   : > { %v2808_v8 = vpop.eup %2807  ;;  %v2407_v33 = vpack.c.bf16 %v1645_v57, %v1644_v0  ;;  %v1643_v34 = vmul.f32 %v1579_v35, %v3405_v13  ;;  %2827 = vrcp.f32 %v1326_v31  ;;  %v1329_v59 = vadd.f32 1.0, %v3555_v7 }
 0x159   : > { %v3563_v36 = vpop.eup %2809  ;;  %2479 = vst [vmem:[%s3567_s8 + $0x8] sm:$0xff] %v2327_v27   ;;  %v2322_v12 = vpack.c.bf16 %v1611_v28, %v1610_v2  ;;  %2829 = vrcp.f32 %v1297_v32  ;;  %v940_v62 = vmul.f32 %v3364_v40, %v800_v63  ;;  %v1488_v1 = vmul.f32 %v2808_v8, %v3489_v61  ;;  %v685_v28 = vpop.f32.mrf.mxu0 }
 0x15a   : > { %v3570_v38 = vpop.eup %2811  ;;  %2495 = vst [vmem:[%s3567_s8 + $0x88] sm:$0xff] %v2407_v33   ;;  %v2402_v13 = vpack.c.bf16 %v1643_v34, %v1642_v17  ;;  %2831 = vrcp.f32 %v1329_v59  ;;  %v1295_v46 = vadd.f32 1.0, %v3563_v36  ;;  %v3587_v48 = vadd.f32 %v3369_v42, %v908_v54 }
 0x15b   : > { %v3574_v50 = vpop.eup %2813  ;;  %2323 = vst [vmem:[%s3567_s8] sm:$0xff] %v2322_v12   ;;  %v1327_v51 = vadd.f32 1.0, %v3570_v38  ;;  %v913_v14 = vmul.f32 %v2580_v47, %v3364_v40  ;;  %v3593_v3 = vadd.f32 %v3369_v42, %v940_v62  ;;  %v945_v31 = vmul.f32 %v2612_v9, %v3364_v40 }
 0x15c   : > { %v3580_v55 = vpop.eup %2815  ;;  %2494 = vst [vmem:[%s3567_s8 + $0x80] sm:$0xff] %v2402_v13   ;;  %2833 = vrcp.f32 %v1295_v46  ;;  %v1300_v60 = vadd.f32 1.0, %v3574_v50  ;;  %v1043_v61 = vand.u32 2147483647, %v3587_v48  ;;  %v911_v63 = vmul.f32 %v3364_v40, %v685_v28 }
 0x15d   : > { %v2818_v0 = vpop.eup %2817  ;;  %2835 = vrcp.f32 %v1327_v51  ;;  %v1332_v2 = vadd.f32 1.0, %v3580_v55  ;;  %v3601_v18 = vadd.f32 %v3369_v42, %v913_v14  ;;  %v1075_v56 = vand.u32 2147483647, %v3593_v3  ;;  %v813_v51 = vpop.f32.mrf.mxu1 }
 0x15e   : > { %2837 = vrcp.f32 %v1300_v60  ;;  %v3595_v15 = vpop.eup %2819  ;;  %v1520_v17 = vmul.f32 %v2818_v0, %v3510_v25  ;;  %v1552_v25 = vsel %vm1424_vm8, %v2808_v8, %v1488_v1  ;;  %v1107_v21 = vsub.f32 0.0, %v1043_v61 }
 0x15f   : > { %v1298_v22 = vadd.f32 1.0, %v3595_v15  ;;  %2839 = vpow2.f32 %v1248_v6  ;;  %v1139_v24 = vsub.f32 0.0, %v1075_v56  ;;  %v1048_v27 = vand.u32 2147483647, %v3601_v18 }
 0x160   : > { %v2822_v49 = vpop.eup %2821  ;;  %2841 = vrcp.f32 %v1332_v2  ;;  %v1584_v35 = vsel %vm1456_vm9, %v2818_v0, %v1520_v17  ;;  %v1616_v8 = vmul.f32 %v1552_v25, %v3413_v30  ;;  %v3626_v37 = vadd.f32 %v3369_v42, %v945_v31 }
 0x161   : > { %v3607_v26 = vpop.eup %2823  ;;  %v1486_v57 = vmul.f32 %v2822_v49, %v3525_v45  ;;  %v1180_v45 = vmul.f32 1.442695, %v1107_v21  ;;  %2843 = vrcp.f32 %v1298_v22  ;;  %v1244_v33 = vmul.f32 1.442695, %v1139_v24 }
 0x162   : > { %v3613_v23 = vpop.eup %2825  ;;  %v1112_v34 = vsub.f32 0.0, %v1048_v27  ;;  %v1648_v46 = vmul.f32 %v1584_v35, %v3421_v39  ;;  %v1330_v6 = vadd.f32 1.0, %v3607_v26  ;;  %v1080_v62 = vand.u32 2147483647, %v3626_v37 }
 0x163   : > { %v1301_v32 = vadd.f32 1.0, %v3613_v23  ;;  %v1550_v12 = vsel %vm1422_vm10, %v2822_v49, %v1486_v57  ;;  %v3637_v39 = vadd.f32 %v3369_v42, %v911_v63  ;;  %v943_v17 = vmul.f32 %v3364_v40, %v813_v51 }
 0x164   : > { %v1190_v47 = vmul.f32 1.442695, %v1112_v34  ;;  %v1614_v0 = vmul.f32 %v1550_v12, %v3424_v41  ;;  %v1144_v9 = vsub.f32 0.0, %v1080_v62  ;;  %vm1460_vm1 = vcmp.ge.f32.partialorder %v3483_v52, 0.0 }
 0x165   : > { %v2828_v59 = vpop.eup %2827  ;;  %2845 = vrcp.f32 %v1301_v32  ;;  %v1046_v22 = vand.u32 2147483647, %v3637_v39  ;;  %vm1429_vm2 = vcmp.ge.f32.partialorder %v3502_v16, 0.0  ;;  %vm1461_vm3 = vcmp.ge.f32.partialorder %v3523_v44, 0.0 }
 0x166   : > { %v2830_v13 = vpop.eup %2829  ;;  %v1518_v30 = vmul.f32 %v2828_v59, %v3542_v19  ;;  %2847 = vpow2.f32 %v1180_v45  ;;  %v2581_v19 = vpop.f32.mrf.mxu0  ;;  %v1254_v21 = vmul.f32 1.442695, %v1144_v9  ;;  %vm1426_vm4 = vcmp.ge.f32.partialorder %v3496_v4, 0.0 }
 0x167   : > { %v2832_v54 = vpop.eup %2831  ;;  %v1489_v60 = vmul.f32 %v2830_v13, %v3548_v20  ;;  %2849 = vpow2.f32 %v1244_v33  ;;  %v914_v31 = vmul.f32 %v2581_v19, %v3364_v40  ;;  %v1110_v28 = vsub.f32 0.0, %v1046_v22 }
 0x168   : > { %v1521_v1 = vmul.f32 %v2832_v54, %v3555_v7  ;;  %2851 = vpow2.f32 %v1190_v47  ;;  %v1582_v2 = vsel %vm1454_vm11, %v2828_v59, %v1518_v30  ;;  %v2613_v59 = vpop.f32.mrf.mxu1  ;;  %v688_v63 = vpop.f32.mrf.mxu0  ;;  %vm1458_vm5 = vcmp.ge.f32.partialorder %v3499_v5, 0.0 }
 0x169   : > { %v2834_v14 = vpop.eup %2833  ;;  %v1553_v20 = vsel %vm1425_vm12, %v2830_v13, %v1489_v60  ;;  %v1646_v24 = vmul.f32 %v1582_v2, %v3427_v43  ;;  %2853 = vpow2.f32 %v1254_v21  ;;  %v946_v51 = vmul.f32 %v2613_v59, %v3364_v40 }
 0x16a   : > { %v2836_v61 = vpop.eup %2835  ;;  %v1617_v41 = vmul.f32 %v1553_v20, %v3433_v53  ;;  %v1585_v7 = vsel %vm1457_vm13, %v2832_v54, %v1521_v1  ;;  %v1487_v49 = vmul.f32 %v2834_v14, %v3563_v36  ;;  %2855 = vrcp.f32 %v1330_v6  ;;  %v816_v1 = vpop.f32.mrf.mxu1 }
 0x16b   : > { %v2838_v56 = vpop.eup %2837  ;;  %v1649_v25 = vmul.f32 %v1585_v7, %v3437_v58  ;;  %v1519_v57 = vmul.f32 %v2836_v61, %v3570_v38  ;;  %v3661_v38 = vadd.f32 %v3369_v42, %v943_v17  ;;  %v2584_v2 = vpop.f32.mrf.mxu0  ;;  %vm1427_vm6 = vcmp.ge.f32.partialorder %v3587_v48, 0.0 }
 0x16c   : > { %v2337_v53 = vpack.c.bf16 %v1617_v41, %v1616_v8  ;;  %v1551_v27 = vsel %vm1423_vm14, %v2834_v14, %v1487_v49  ;;  %v3655_v36 = vpop.eup %2839  ;;  %v1492_v45 = vmul.f32 %v2838_v56, %v3574_v50  ;;  %v3674_v50 = vadd.f32 %v3369_v42, %v914_v31 }
 0x16d   : > { %v2417_v35 = vpack.c.bf16 %v1649_v25, %v1648_v46  ;;  %v1615_v32 = vmul.f32 %v1551_v27, %v3452_v10  ;;  %v1583_v58 = vsel %vm1455_vm15, %v2836_v61, %v1519_v57  ;;  %v1333_v8 = vadd.f32 1.0, %v3655_v36  ;;  %v2842_v33 = vpop.eup %2841  ;;  %v2616_v25 = vpop.f32.mrf.mxu1 }
 0x16e   : > { %2481 = vst [vmem:[%s3567_s8 + $0x18] sm:$0xff] %v2337_v53   ;;  %v1647_v43 = vmul.f32 %v1583_v58, %v3455_v11  ;;  %v1186_v10 = vmul.f32 1.442695, %v1110_v28  ;;  %v3668_v13 = vpop.eup %2843  ;;  %v1078_v11 = vand.u32 2147483647, %v3661_v38  ;;  %v1556_v30 = vsel %vm1428_vm0, %v2838_v56, %v1492_v45 }
 0x16f   : > { %2497 = vst [vmem:[%s3567_s8 + $0x98] sm:$0xff] %v2417_v35   ;;  %v2332_v34 = vpack.c.bf16 %v1615_v32, %v1614_v0  ;;  %2857 = vrcp.f32 %v1333_v8  ;;  %v1524_v47 = vmul.f32 %v2842_v33, %v3580_v55  ;;  %v1049_v62 = vand.u32 2147483647, %v3674_v50 }
 0x170   : > { %v2412_v12 = vpack.c.bf16 %v1647_v43, %v1646_v24  ;;  %2859 = vpow2.f32 %v1186_v10  ;;  %v1142_v6 = vsub.f32 0.0, %v1078_v11  ;;  %v912_v0 = vmul.f32 %v3364_v40, %v688_v63  ;;  %v701_v24 = vpop.f32.mrf.mxu0 }
 0x171   : > { %2480 = vst [vmem:[%s3567_s8 + $0x10] sm:$0xff] %v2332_v34   ;;  %v3690_v14 = vadd.f32 %v3369_v42, %v946_v51  ;;  %v1588_v41 = vsel %vm1460_vm1, %v2842_v33, %v1524_v47  ;;  %v1113_v49 = vsub.f32 0.0, %v1049_v62  ;;  %v944_v31 = vmul.f32 %v3364_v40, %v816_v1  ;;  %v829_v33 = vpop.f32.mrf.mxu1 }
 0x172   : > { %v2846_v46 = vpop.eup %2845  ;;  %2496 = vst [vmem:[%s3567_s8 + $0x90] sm:$0xff] %v2412_v12   ;;  %v1250_v61 = vmul.f32 1.442695, %v1142_v6  ;;  %v3700_v56 = vadd.f32 %v3369_v42, %v912_v0  ;;  %v917_v35 = vmul.f32 %v2584_v2, %v3364_v40  ;;  %v949_v32 = vmul.f32 %v2616_v25, %v3364_v40 }
 0x173   : > { %v3679_v54 = vpop.eup %2847  ;;  %v1493_v60 = vmul.f32 %v2846_v46, %v3613_v23  ;;  %v1620_v23 = vmul.f32 %v1556_v30, %v3470_v29  ;;  %v1081_v22 = vand.u32 2147483647, %v3690_v14  ;;  %v1192_v21 = vmul.f32 1.442695, %v1113_v49 }
 0x174   : > { %v3684_v19 = vpop.eup %2849  ;;  %v1299_v55 = vadd.f32 1.0, %v3679_v54  ;;  %v1047_v27 = vand.u32 2147483647, %v3700_v56  ;;  %v3709_v28 = vadd.f32 %v3369_v42, %v944_v31  ;;  %v915_v8 = vmul.f32 %v3364_v40, %v701_v24 }
 0x175   : > { %v3692_v20 = vpop.eup %2851  ;;  %v1557_v9 = vsel %vm1429_vm2, %v2846_v46, %v1493_v60  ;;  %v1331_v17 = vadd.f32 1.0, %v3684_v19  ;;  %v1145_v53 = vsub.f32 0.0, %v1081_v22  ;;  %v3722_v12 = vadd.f32 %v3369_v42, %v917_v35 }
 0x176   : > { %v1621_v7 = vmul.f32 %v1557_v9, %v3502_v16  ;;  %2861 = vrcp.f32 %v1299_v55  ;;  %v1304_v57 = vadd.f32 1.0, %v3692_v20  ;;  %v1652_v16 = vmul.f32 %v1588_v41, %v3483_v52  ;;  %v3713_v58 = vpop.eup %2853 }
 0x177   : > { %2863 = vrcp.f32 %v1331_v17  ;;  %v1490_v52 = vmul.f32 %v3668_v13, %v3595_v15  ;;  %v1256_v43 = vmul.f32 1.442695, %v1145_v53  ;;  %v1111_v45 = vsub.f32 0.0, %v1047_v27  ;;  %v2856_v34 = vpop.eup %2855 }
 0x178   : > { %v2347_v29 = vpack.c.bf16 %v1621_v7, %v1620_v23  ;;  %2865 = vpow2.f32 %v1250_v61  ;;  %v1336_v10 = vadd.f32 1.0, %v3713_v58  ;;  %v1079_v59 = vand.u32 2147483647, %v3709_v28  ;;  %v2585_v23 = vpop.f32.mrf.mxu0 }
 0x179   : > { %2867 = vpow2.f32 %v1192_v21  ;;  %v1188_v15 = vmul.f32 1.442695, %v1111_v45  ;;  %v3726_v11 = vadd.f32 %v3369_v42, %v949_v32  ;;  %v3729_v46 = vadd.f32 %v3369_v42, %v915_v8 }
 0x17a   : > { %2483 = vst [vmem:[%s3567_s8 + $0x28] sm:$0xff] %v2347_v29   ;;  %2869 = vrcp.f32 %v1304_v57  ;;  %vm1459_vm7 = vcmp.ge.f32.partialorder %v3593_v3, 0.0  ;;  %v1143_v51 = vsub.f32 0.0, %v1079_v59  ;;  %v1052_v60 = vand.u32 2147483647, %v3722_v12  ;;  %v2617_v57 = vpop.f32.mrf.mxu1 }
 0x17b   : > { %2871 = vpow2.f32 %v1256_v43  ;;  %v947_v6 = vmul.f32 %v3364_v40, %v829_v33  ;;  %v1522_v62 = vmul.f32 %v2856_v34, %v3607_v26  ;;  %v1084_v1 = vand.u32 2147483647, %v3726_v11 }
 0x17c   : > { %v2858_v63 = vpop.eup %2857  ;;  %2873 = vpow2.f32 %v1188_v15  ;;  %v1252_v2 = vmul.f32 1.442695, %v1143_v51  ;;  %v1050_v61 = vand.u32 2147483647, %v3729_v46  ;;  %v1554_v26 = vsel %vm1426_vm4, %v3668_v13, %v1490_v52  ;;  %v832_v51 = vpop.f32.mrf.mxu1 }
 0x17d   : > { %v3731_v30 = vpop.eup %2859  ;;  %v1525_v47 = vmul.f32 %v2858_v63, %v3655_v36  ;;  %2875 = vrcp.f32 %v1336_v10  ;;  %v1116_v36 = vsub.f32 0.0, %v1052_v60  ;;  %v1148_v17 = vsub.f32 0.0, %v1084_v1 }
 0x17e   : > { %v1302_v0 = vadd.f32 1.0, %v3731_v30  ;;  %v3748_v7 = vadd.f32 %v3369_v42, %v947_v6  ;;  %v1114_v29 = vsub.f32 0.0, %v1050_v61  ;;  %v1586_v31 = vsel %vm1458_vm5, %v2856_v34, %v1522_v62  ;;  %v704_v34 = vpop.f32.mrf.mxu0 }
 0x17f   : > { %v1589_v55 = vsel %vm1461_vm3, %v2858_v63, %v1525_v47  ;;  %v1198_v41 = vmul.f32 1.442695, %v1116_v36  ;;  %v1262_v25 = vmul.f32 1.442695, %v1148_v17  ;;  %v1618_v32 = vmul.f32 %v1554_v26, %v3496_v4 }
 0x180   : > { %v1653_v9 = vmul.f32 %v1589_v55, %v3523_v44  ;;  %2877 = vrcp.f32 %v1302_v0  ;;  %v918_v44 = vmul.f32 %v2585_v23, %v3364_v40  ;;  %v1082_v13 = vand.u32 2147483647, %v3748_v7  ;;  %v2588_v1 = vpop.f32.mrf.mxu0 }
 0x181   : > { %2879 = vpow2.f32 %v1252_v2  ;;  %v1194_v27 = vmul.f32 1.442695, %v1114_v29  ;;  %v1650_v4 = vmul.f32 %v1586_v31, %v3499_v5  ;;  %v916_v0 = vmul.f32 %v3364_v40, %v704_v34 }
 0x182   : > { %v2427_v22 = vpack.c.bf16 %v1653_v9, %v1652_v16  ;;  %2881 = vpow2.f32 %v1198_v41  ;;  %v3758_v16 = vadd.f32 %v3369_v42, %v918_v44  ;;  %v1146_v43 = vsub.f32 0.0, %v1082_v13  ;;  %v717_v31 = vpop.f32.mrf.mxu0 }
 0x183   : > { %v2862_v49 = vpop.eup %2861  ;;  %2883 = vpow2.f32 %v1262_v25  ;;  %v948_v23 = vmul.f32 %v3364_v40, %v832_v51  ;;  %v3792_v26 = vadd.f32 %v3369_v42, %v916_v0  ;;  %vm1432_vm8 = vcmp.ge.f32.partialorder %v3601_v18, 0.0 }
 0x184   : > { %v2864_v21 = vpop.eup %2863  ;;  %v1491_v24 = vmul.f32 %v2862_v49, %v3679_v54  ;;  %2499 = vst [vmem:[%s3567_s8 + $0xa8] sm:$0xff] %v2427_v22   ;;  %v950_v54 = vmul.f32 %v2617_v57, %v3364_v40  ;;  %2885 = vpow2.f32 %v1194_v27  ;;  %v1258_v63 = vmul.f32 1.442695, %v1146_v43  ;;  %v3824_v43 = vld [vmem:[%s4258_s3] ss:$0 sm:$0xff] }
 0x185   : > { %v1523_v53 = vmul.f32 %v2864_v21, %v3684_v19  ;;  %v3760_v35 = vpop.eup %2865  ;;  %v3796_v22 = vadd.f32 %v3369_v42, %v948_v23  ;;  %vm1464_vm9 = vcmp.ge.f32.partialorder %v3626_v37, 0.0  ;;  %vm1430_vm10 = vcmp.ge.f32.partialorder %v3637_v39, 0.0 }
 0x186   : > { %v1555_v52 = vsel %vm1427_vm6, %v2862_v49, %v1491_v24  ;;  %v3766_v45 = vpop.eup %2867  ;;  %v1334_v33 = vadd.f32 1.0, %v3760_v35  ;;  %v3779_v62 = vadd.f32 %v3369_v42, %v950_v54  ;;  %v1051_v29 = vand.u32 2147483647, %v3792_v26 }
 0x187   : > { %v1619_v8 = vmul.f32 %v1555_v52, %v3587_v48  ;;  %v1587_v19 = vsel %vm1459_vm7, %v2864_v21, %v1523_v53  ;;  %v1305_v59 = vadd.f32 1.0, %v3766_v45  ;;  %v2870_v15 = vpop.eup %2869  ;;  %v1053_v48 = vand.u32 2147483647, %v3758_v16  ;;  %v2620_v21 = vpop.f32.mrf.mxu1 }
 0x188   : > { %v1651_v10 = vmul.f32 %v1587_v19, %v3593_v3  ;;  %2887 = vrcp.f32 %v1334_v33  ;;  %v3776_v60 = vpop.eup %2871  ;;  %v1496_v2 = vmul.f32 %v2870_v15, %v3692_v20  ;;  %v1085_v36 = vand.u32 2147483647, %v3779_v62  ;;  %v3801_v20 = vld [vmem:[%s4257_s2] ss:$0 sm:$0xff] }
 0x189   : > { %v2342_v47 = vpack.c.bf16 %v1619_v8, %v1618_v32  ;;  %2889 = vrcp.f32 %v1305_v59  ;;  %v1337_v5 = vadd.f32 1.0, %v3776_v60  ;;  %v1117_v3 = vsub.f32 0.0, %v1053_v48  ;;  %v3784_v55 = vpop.eup %2873  ;;  %v845_v59 = vpop.f32.mrf.mxu1 }
 0x18a   : > { %v2422_v6 = vpack.c.bf16 %v1651_v10, %v1650_v4  ;;  %2891 = vpow2.f32 %v1258_v63  ;;  %v2876_v9 = vpop.eup %2875  ;;  %v1303_v17 = vadd.f32 1.0, %v3784_v55  ;;  %v1149_v49 = vsub.f32 0.0, %v1085_v36  ;;  %v2589_v63 = vpop.f32.mrf.mxu0 }
 0x18b   : > { %2482 = vst [vmem:[%s3567_s8 + $0x20] sm:$0xff] %v2342_v47   ;;  %2893 = vrcp.f32 %v1337_v5  ;;  %v1200_v61 = vmul.f32 1.442695, %v1117_v3  ;;  %v921_v40 = vmul.f32 %v3801_v20, %v2588_v1  ;;  %v1528_v44 = vmul.f32 %v2876_v9, %v3713_v58 }
 0x18c   : > { %2498 = vst [vmem:[%s3567_s8 + $0xa0] sm:$0xff] %v2422_v6   ;;  %2895 = vrcp.f32 %v1303_v17  ;;  %v1264_v57 = vmul.f32 1.442695, %v1149_v49  ;;  %v1560_v13 = vsel %vm1432_vm8, %v2870_v15, %v1496_v2  ;;  %vm1433_vm11 = vcmp.ge.f32.partialorder %v3674_v50, 0.0 }
 0x18d   : > { %v2878_v41 = vpop.eup %2877  ;;  %2897 = vpow2.f32 %v1200_v61  ;;  %v1115_v53 = vsub.f32 0.0, %v1051_v29  ;;  %v1083_v27 = vand.u32 2147483647, %v3796_v22  ;;  %v3827_v54 = vadd.f32 %v3824_v43, %v921_v40 }
 0x18e   : > { %v3804_v25 = vpop.eup %2879  ;;  %v1494_v58 = vmul.f32 %v2878_v41, %v3731_v30  ;;  %v1592_v30 = vsel %vm1464_vm9, %v2876_v9, %v1528_v44  ;;  %vm1465_vm12 = vcmp.ge.f32.partialorder %v3690_v14, 0.0  ;;  %v953_v10 = vmul.f32 %v3801_v20, %v2620_v21 }
 0x18f   : > { %v1335_v42 = vadd.f32 1.0, %v3804_v25  ;;  %v3811_v24 = vpop.eup %2881  ;;  %v1196_v19 = vmul.f32 1.442695, %v1115_v53  ;;  %v1147_v33 = vsub.f32 0.0, %v1083_v27  ;;  %v1056_v4 = vand.u32 2147483647, %v3827_v54 }
 0x190   : > { %v3817_v32 = vpop.eup %2883  ;;  %v1308_v52 = vadd.f32 1.0, %v3811_v24  ;;  %v919_v48 = vmul.f32 %v3801_v20, %v717_v31  ;;  %v1558_v6 = vsel %vm1430_vm10, %v2878_v41, %v1494_v58  ;;  %vm1462_vm13 = vcmp.ge.f32.partialorder %v3661_v38, 0.0 }
 0x191   : > { %2899 = vrcp.f32 %v1335_v42  ;;  %v1340_v8 = vadd.f32 1.0, %v3817_v32  ;;  %v3830_v34 = vpop.eup %2885  ;;  %v1260_v47 = vmul.f32 1.442695, %v1147_v33  ;;  %vm1431_vm14 = vcmp.ge.f32.partialorder %v3700_v56, 0.0 }
 0x192   : > { %2901 = vpow2.f32 %v1264_v57  ;;  %v1306_v15 = vadd.f32 1.0, %v3830_v34  ;;  %v1120_v5 = vsub.f32 0.0, %v1056_v4  ;;  %v3844_v3 = vadd.f32 %v3824_v43, %v953_v10 }
 0x193   : > { %2903 = vrcp.f32 %v1308_v52  ;;  %v3847_v1 = vadd.f32 %v3824_v43, %v919_v48  ;;  %v951_v2 = vmul.f32 %v3801_v20, %v845_v59  ;;  %v922_v36 = vmul.f32 %v3801_v20, %v2589_v63  ;;  %v2621_v59 = vpop.f32.mrf.mxu1 }
 0x194   : > { %2905 = vrcp.f32 %v1340_v8  ;;  %v1206_v17 = vmul.f32 1.442695, %v1120_v5  ;;  %v1088_v61 = vand.u32 2147483647, %v3844_v3  ;;  %v1624_v41 = vmul.f32 %v1560_v13, %v3601_v18 }
 0x195   : > { %v2888_v51 = vpop.eup %2887  ;;  %2907 = vpow2.f32 %v1196_v19  ;;  %v1656_v49 = vmul.f32 %v1592_v30, %v3626_v37  ;;  %v1054_v29 = vand.u32 2147483647, %v3847_v1  ;;  %v1622_v42 = vmul.f32 %v1558_v6, %v3637_v39 }
 0x196   : > { %v2890_v0 = vpop.eup %2889  ;;  %2909 = vrcp.f32 %v1306_v15  ;;  %v1526_v21 = vmul.f32 %v2888_v51, %v3760_v35  ;;  %v3866_v27 = vadd.f32 %v3824_v43, %v951_v2  ;;  %v3869_v39 = vadd.f32 %v3824_v43, %v922_v36 }
 0x197   : > { %v3851_v23 = vpop.eup %2891  ;;  %v1497_v9 = vmul.f32 %v2890_v0, %v3766_v45  ;;  %2911 = vpow2.f32 %v1260_v47  ;;  %v1152_v45 = vsub.f32 0.0, %v1088_v61  ;;  %v1118_v13 = vsub.f32 0.0, %v1054_v29 }
 0x198   : > { %v1338_v40 = vadd.f32 1.0, %v3851_v23  ;;  %v2894_v44 = vpop.eup %2893  ;;  %2913 = vpow2.f32 %v1206_v17  ;;  %v1086_v33 = vand.u32 2147483647, %v3866_v27  ;;  %v1590_v4 = vsel %vm1462_vm13, %v2888_v51, %v1526_v21 }
 0x199   : > { %v1561_v57 = vsel %vm1433_vm11, %v2890_v0, %v1497_v9  ;;  %v1529_v18 = vmul.f32 %v2894_v44, %v3776_v60  ;;  %v2896_v37 = vpop.eup %2895  ;;  %v1270_v53 = vmul.f32 1.442695, %v1152_v45  ;;  %v1202_v60 = vmul.f32 1.442695, %v1118_v13 }
 0x19a   : > { %v1625_v31 = vmul.f32 %v1561_v57, %v3674_v50  ;;  %2915 = vrcp.f32 %v1338_v40  ;;  %v3871_v58 = vpop.eup %2897  ;;  %v1495_v50 = vmul.f32 %v2896_v37, %v3784_v55  ;;  %v1057_v55 = vand.u32 2147483647, %v3869_v39  ;;  %v848_v57 = vpop.f32.mrf.mxu1 }
 0x19b   : > { %v1593_v35 = vsel %vm1465_vm12, %v2894_v44, %v1529_v18  ;;  %v1309_v19 = vadd.f32 1.0, %v3871_v58  ;;  %2917 = vpow2.f32 %v1270_v53  ;;  %vm1463_vm15 = vcmp.ge.f32.partialorder %v3709_v28, 0.0 }
 0x19c   : > { %v2357_v52 = vpack.c.bf16 %v1625_v31, %v1624_v41  ;;  %v1657_v8 = vmul.f32 %v1593_v35, %v3690_v14  ;;  %v1559_v10 = vsel %vm1431_vm14, %v2896_v37, %v1495_v50  ;;  %2919 = vpow2.f32 %v1202_v60  ;;  %v720_v41 = vpop.f32.mrf.mxu0 }
 0x19d   : > { %v1623_v15 = vmul.f32 %v1559_v10, %v3700_v56  ;;  %2921 = vrcp.f32 %v1309_v19  ;;  %v1150_v6 = vsub.f32 0.0, %v1086_v33  ;;  %v1121_v5 = vsub.f32 0.0, %v1057_v55 }
 0x19e   : > { %v2900_v30 = vpop.eup %2899  ;;  %2485 = vst [vmem:[%s3567_s8 + $0x38] sm:$0xff] %v2357_v52   ;;  %v2437_v14 = vpack.c.bf16 %v1657_v8, %v1656_v49  ;;  %v954_v9 = vmul.f32 %v3801_v20, %v2621_v59  ;;  %v1654_v56 = vmul.f32 %v1590_v4, %v3661_v38  ;;  %vm1436_vm0 = vcmp.ge.f32.partialorder %v3722_v12, 0.0  ;;  %v2592_v13 = vpop.f32.mrf.mxu0 }
 0x19f   : > { %v3885_v63 = vpop.eup %2901  ;;  %v1527_v47 = vmul.f32 %v2900_v30, %v3804_v25  ;;  %v2352_v2 = vpack.c.bf16 %v1623_v15, %v1622_v42  ;;  %v1266_v61 = vmul.f32 1.442695, %v1150_v6  ;;  %vm1468_vm1 = vcmp.ge.f32.partialorder %v3726_v11, 0.0  ;;  %v2624_v52 = vpop.f32.mrf.mxu1 }
 0x1a0   : > { %v2904_v48 = vpop.eup %2903  ;;  %v1341_v51 = vadd.f32 1.0, %v3885_v63  ;;  %2501 = vst [vmem:[%s3567_s8 + $0xb8] sm:$0xff] %v2437_v14   ;;  %v3902_v42 = vadd.f32 %v3824_v43, %v954_v9  ;;  %vm1434_vm2 = vcmp.ge.f32.partialorder %v3729_v46, 0.0  ;;  %vm1437_vm3 = vcmp.ge.f32.partialorder %v3758_v16, 0.0 }
 0x1a1   : > { %v2906_v0 = vpop.eup %2905  ;;  %v1591_v36 = vsel %vm1463_vm15, %v2900_v30, %v1527_v47  ;;  %2484 = vst [vmem:[%s3567_s8 + $0x30] sm:$0xff] %v2352_v2   ;;  %v1500_v40 = vmul.f32 %v2904_v48, %v3811_v24  ;;  %v920_v18 = vmul.f32 %v3801_v20, %v720_v41  ;;  %v952_v8 = vmul.f32 %v3801_v20, %v848_v57  ;;  %v733_v2 = vpop.f32.mrf.mxu0 }
 0x1a2   : > { %v3893_v17 = vpop.eup %2907  ;;  %v1655_v25 = vmul.f32 %v1591_v36, %v3709_v28  ;;  %2923 = vrcp.f32 %v1341_v51  ;;  %v1532_v29 = vmul.f32 %v2906_v0, %v3817_v32  ;;  %v1208_v28 = vmul.f32 1.442695, %v1121_v5  ;;  %v861_v36 = vpop.f32.mrf.mxu1 }
 0x1a3   : > { %v2910_v49 = vpop.eup %2909  ;;  %v1307_v44 = vadd.f32 1.0, %v3893_v17  ;;  %v1089_v32 = vand.u32 2147483647, %v3902_v42  ;;  %v1564_v37 = vsel %vm1436_vm0, %v2904_v48, %v1500_v40  ;;  %v3919_v60 = vadd.f32 %v3824_v43, %v920_v18 }
 0x1a4   : > { %v3904_v45 = vpop.eup %2911  ;;  %v2432_v38 = vpack.c.bf16 %v1655_v25, %v1654_v56  ;;  %v1498_v21 = vmul.f32 %v2910_v49, %v3830_v34  ;;  %v1596_v53 = vsel %vm1468_vm1, %v2906_v0, %v1532_v29  ;;  %vm1469_vm4 = vcmp.ge.f32.partialorder %v3779_v62, 0.0 }
 0x1a5   : > { %2925 = vrcp.f32 %v1307_v44  ;;  %v1339_v24 = vadd.f32 1.0, %v3904_v45  ;;  %v3911_v31 = vpop.eup %2913  ;;  %v1153_v34 = vsub.f32 0.0, %v1089_v32  ;;  %v925_v30 = vmul.f32 %v3801_v20, %v2592_v13 }
 0x1a6   : > { %2500 = vst [vmem:[%s3567_s8 + $0xb0] sm:$0xff] %v2432_v38   ;;  %2927 = vpow2.f32 %v1266_v61  ;;  %v1312_v50 = vadd.f32 1.0, %v3911_v31  ;;  %v1562_v19 = vsel %vm1434_vm2, %v2910_v49, %v1498_v21  ;;  %v1628_v10 = vmul.f32 %v1564_v37, %v3722_v12 }
 0x1a7   : > { %2929 = vrcp.f32 %v1339_v24  ;;  %v2916_v35 = vpop.eup %2915  ;;  %v1272_v33 = vmul.f32 1.442695, %v1153_v34  ;;  %vm1466_vm5 = vcmp.ge.f32.partialorder %v3748_v7, 0.0  ;;  %v1055_v55 = vand.u32 2147483647, %v3919_v60 }
 0x1a8   : > { %2931 = vpow2.f32 %v1208_v28  ;;  %v3924_v4 = vpop.eup %2917  ;;  %v3930_v59 = vadd.f32 %v3824_v43, %v952_v8  ;;  %v957_v14 = vmul.f32 %v3801_v20, %v2624_v52  ;;  %v1660_v47 = vmul.f32 %v1596_v53, %v3726_v11 }
 0x1a9   : > { %v3933_v15 = vpop.eup %2919  ;;  %v1344_v48 = vadd.f32 1.0, %v3924_v4  ;;  %2933 = vpow2.f32 %v1272_v33  ;;  %v3938_v51 = vadd.f32 %v3824_v43, %v925_v30  ;;  %v3941_v6 = vmul.f32 %v1562_v19, %v3729_v46 }
 0x1aa   : > { %v2922_v12 = vpop.eup %2921  ;;  %vm1435_vm6 = vcmp.ge.f32.partialorder %v3792_v26, 0.0  ;;  %2935 = vrcp.f32 %v1312_v50  ;;  %v1119_v5 = vsub.f32 0.0, %v1055_v55  ;;  %v1087_v0 = vand.u32 2147483647, %v3930_v59  ;;  %v2593_v50 = vpop.f32.mrf.mxu0 }
 0x1ab   : > { %v1530_v11 = vmul.f32 %v2916_v35, %v3851_v23  ;;  %v1501_v9 = vmul.f32 %v2922_v12, %v3871_v58  ;;  %v1310_v56 = vadd.f32 1.0, %v3933_v15  ;;  %v1060_v25 = vand.u32 2147483647, %v3938_v51 }
 0x1ac   : > { %vm1467_vm7 = vcmp.ge.f32.partialorder %v3796_v22, 0.0  ;;  %2937 = vrcp.f32 %v1344_v48  ;;  %v1204_v46 = vmul.f32 1.442695, %v1119_v5  ;;  %v1151_v61 = vsub.f32 0.0, %v1087_v0  ;;  %v2625_v5 = vpop.f32.mrf.mxu1 }
 0x1ad   : > { %v3951_v41 = vadd.f32 %v3824_v43, %v957_v14  ;;  %v1565_v40 = vsel %vm1437_vm3, %v2922_v12, %v1501_v9  ;;  %v1124_v29 = vsub.f32 0.0, %v1060_v25  ;;  %v923_v23 = vmul.f32 %v3801_v20, %v733_v2 }
 0x1ae   : > { %v955_v58 = vmul.f32 %v3801_v20, %v861_v36  ;;  %v1629_v44 = vmul.f32 %v1565_v40, %v3758_v16  ;;  %2939 = vpow2.f32 %v1204_v46  ;;  %v1268_v38 = vmul.f32 1.442695, %v1151_v61  ;;  %v736_v36 = vpop.f32.mrf.mxu0 }
 0x1af   : > { %v2924_v49 = vpop.eup %2923  ;;  %2941 = vrcp.f32 %v1310_v56  ;;  %v1214_v28 = vmul.f32 1.442695, %v1124_v29  ;;  %v1092_v21 = vand.u32 2147483647, %v3951_v41  ;;  %v3961_v24 = vadd.f32 %v3824_v43, %v923_v23 }
 0x1b0   : > { %v1533_v57 = vmul.f32 %v2924_v49, %v3885_v63  ;;  %v2367_v18 = vpack.c.bf16 %v1629_v44, %v1628_v10  ;;  %2943 = vpow2.f32 %v1268_v38  ;;  %v3966_v16 = vadd.f32 %v3824_v43, %v955_v58  ;;  %v2596_v23 = vpop.f32.mrf.mxu0 }
 0x1b1   : > { %v1594_v37 = vsel %vm1466_vm5, %v2916_v35, %v1530_v11  ;;  %v1156_v52 = vsub.f32 0.0, %v1092_v21  ;;  %2945 = vpow2.f32 %v1214_v28  ;;  %v1058_v33 = vand.u32 2147483647, %v3961_v24 }
 0x1b2   : > { %v2926_v32 = vpop.eup %2925  ;;  %v1597_v13 = vsel %vm1469_vm4, %v2924_v49, %v1533_v57  ;;  %2487 = vst [vmem:[%s3567_s8 + $0x48] sm:$0xff] %v2367_v18   ;;  %v1090_v30 = vand.u32 2147483647, %v3966_v16  ;;  %v1658_v0 = vmul.f32 %v1594_v37, %v3748_v7  ;;  %v926_v61 = vmul.f32 %v3801_v20, %v2593_v50  ;;  %v864_v49 = vpop.f32.mrf.mxu1 }
 0x1b3   : > { %v3968_v63 = vpop.eup %2927  ;;  %v1661_v53 = vmul.f32 %v1597_v13, %v3779_v62  ;;  %v1499_v34 = vmul.f32 %v2926_v32, %v3893_v17  ;;  %v1278_v35 = vmul.f32 1.442695, %v1156_v52  ;;  %v1122_v12 = vsub.f32 0.0, %v1058_v33 }
 0x1b4   : > { %v2930_v8 = vpop.eup %2929  ;;  %v1342_v19 = vadd.f32 1.0, %v3968_v63  ;;  %v1154_v2 = vsub.f32 0.0, %v1090_v30  ;;  %v958_v29 = vmul.f32 %v3801_v20, %v2625_v5  ;;  %v4001_v58 = vadd.f32 %v3824_v43, %v926_v61 }
 0x1b5   : > { %v3978_v10 = vpop.eup %2931  ;;  %v2447_v55 = vpack.c.bf16 %v1661_v53, %v1660_v47  ;;  %v1563_v62 = vsel %vm1435_vm6, %v2926_v32, %v1499_v34  ;;  %v1531_v17 = vmul.f32 %v2930_v8, %v3904_v45  ;;  %v1210_v9 = vmul.f32 1.442695, %v1122_v12 }
 0x1b6   : > { %v1627_v14 = vmul.f32 %v1563_v62, %v3792_v26  ;;  %2947 = vrcp.f32 %v1342_v19  ;;  %v1313_v48 = vadd.f32 1.0, %v3978_v10  ;;  %v3989_v11 = vpop.eup %2933  ;;  %v1274_v7 = vmul.f32 1.442695, %v1154_v2 }
 0x1b7   : > { %2503 = vst [vmem:[%s3567_s8 + $0xc8] sm:$0xff] %v2447_v55   ;;  %v1595_v47 = vsel %vm1467_vm7, %v2930_v8, %v1531_v17  ;;  %2949 = vpow2.f32 %v1278_v35  ;;  %v2936_v56 = vpop.eup %2935  ;;  %v1345_v25 = vadd.f32 1.0, %v3989_v11  ;;  %v4006_v57 = vadd.f32 %v3824_v43, %v958_v29 }
 0x1b8   : > { %v2362_v45 = vpack.c.bf16 %v1627_v14, %v3941_v6  ;;  %v1659_v26 = vmul.f32 %v1595_v47, %v3796_v22  ;;  %2951 = vrcp.f32 %v1313_v48  ;;  %v924_v6 = vmul.f32 %v3801_v20, %v736_v36  ;;  %v2628_v48 = vpop.f32.mrf.mxu1 }
 0x1b9   : > { %v2938_v40 = vpop.eup %2937  ;;  %2953 = vrcp.f32 %v1345_v25  ;;  %v1504_v22 = vmul.f32 %v2936_v56, %v3911_v31  ;;  %v956_v28 = vmul.f32 %v3801_v20, %v864_v49  ;;  %vm1440_vm8 = vcmp.ge.f32.partialorder %v3827_v54, 0.0 }
 0x1ba   : > { %2486 = vst [vmem:[%s3567_s8 + $0x40] sm:$0xff] %v2362_v45   ;;  %v2442_v46 = vpack.c.bf16 %v1659_v26, %v1658_v0  ;;  %2955 = vpow2.f32 %v1210_v9  ;;  %v4009_v38 = vadd.f32 %v3824_v43, %v924_v6  ;;  %v1061_v32 = vand.u32 2147483647, %v4001_v58  ;;  %v749_v9 = vpop.f32.mrf.mxu0 }
 0x1bb   : > { %v4003_v44 = vpop.eup %2939  ;;  %2957 = vpow2.f32 %v1274_v7  ;;  %v929_v18 = vmul.f32 %v3801_v20, %v2596_v23  ;;  %vm1472_vm9 = vcmp.ge.f32.partialorder %v3844_v3, 0.0  ;;  %v1536_v37 = vmul.f32 %v2938_v40, %v3924_v4 }
 0x1bc   : > { %2502 = vst [vmem:[%s3567_s8 + $0xc0] sm:$0xff] %v2442_v46   ;;  %v2942_v21 = vpop.eup %2941  ;;  %v1311_v31 = vadd.f32 1.0, %v4003_v44  ;;  %vm1438_vm10 = vcmp.ge.f32.partialorder %v3847_v1, 0.0  ;;  %v1093_v53 = vand.u32 2147483647, %v4006_v57  ;;  %v1125_v52 = vsub.f32 0.0, %v1061_v32 }
 0x1bd   : > { %v4016_v13 = vpop.eup %2943  ;;  %v1059_v50 = vand.u32 2147483647, %v4009_v38  ;;  %v1568_v19 = vsel %vm1440_vm8, %v2936_v56, %v1504_v22  ;;  %v1502_v33 = vmul.f32 %v2942_v21, %v3933_v15  ;;  %v4028_v55 = vadd.f32 %v3824_v43, %v956_v28 }
 0x1be   : > { %2959 = vrcp.f32 %v1311_v31  ;;  %v1343_v34 = vadd.f32 1.0, %v4016_v13  ;;  %v4024_v8 = vpop.eup %2945  ;;  %v1157_v30 = vsub.f32 0.0, %v1093_v53  ;;  %vm1470_vm11 = vcmp.ge.f32.partialorder %v3866_v27, 0.0 }
 0x1bf   : > { %v1216_v4 = vmul.f32 1.442695, %v1125_v52  ;;  %v1123_v62 = vsub.f32 0.0, %v1059_v50  ;;  %v4032_v17 = vadd.f32 %v3824_v43, %v929_v18  ;;  %vm1441_vm12 = vcmp.ge.f32.partialorder %v3869_v39, 0.0 }
 0x1c0   : > { %2961 = vrcp.f32 %v1343_v34  ;;  %vm1473_vm13 = vcmp.ge.f32.partialorder %v3902_v42, 0.0  ;;  %v1280_v14 = vmul.f32 1.442695, %v1157_v30  ;;  %v1091_v15 = vand.u32 2147483647, %v4028_v55 }
 0x1c1   : > { %v1600_v5 = vsel %vm1472_vm9, %v2938_v40, %v1536_v37  ;;  %2963 = vpow2.f32 %v1216_v4  ;;  %v1212_v0 = vmul.f32 1.442695, %v1123_v62  ;;  %v1064_v47 = vand.u32 2147483647, %v4032_v17  ;;  %v877_v40 = vpop.f32.mrf.mxu1  ;;  %v2597_v37 = vpop.f32.mrf.mxu0 }
 0x1c2   : > { %v1632_v36 = vmul.f32 %v1568_v19, %v3827_v54  ;;  %v1566_v45 = vsel %vm1438_vm10, %v2942_v21, %v1502_v33  ;;  %2965 = vpow2.f32 %v1280_v14  ;;  %v1155_v26 = vsub.f32 0.0, %v1091_v15 }
 0x1c3   : > { %v2948_v35 = vpop.eup %2947  ;;  %v1316_v25 = vadd.f32 1.0, %v4024_v8  ;;  %2967 = vpow2.f32 %v1212_v0  ;;  %v1128_v7 = vsub.f32 0.0, %v1064_v47  ;;  %v1664_v46 = vmul.f32 %v1600_v5, %v3844_v3  ;;  %v2629_v52 = vpop.f32.mrf.mxu1 }
 0x1c4   : > { %v4037_v12 = vpop.eup %2949  ;;  %v1534_v61 = vmul.f32 %v2948_v35, %v3968_v63  ;;  %vm1439_vm14 = vcmp.ge.f32.partialorder %v3919_v60, 0.0  ;;  %v1276_v49 = vmul.f32 1.442695, %v1155_v26  ;;  %v961_v54 = vmul.f32 %v3801_v20, %v2628_v48 }
 0x1c5   : > { %v2952_v2 = vpop.eup %2951  ;;  %v4052_v6 = vmul.f32 %v1566_v45, %v3847_v1  ;;  %v1348_v23 = vadd.f32 1.0, %v4037_v12  ;;  %v927_v22 = vmul.f32 %v3801_v20, %v749_v9  ;;  %vm1471_vm15 = vcmp.ge.f32.partialorder %v3930_v59, 0.0 }
 0x1c6   : > { %v1505_v56 = vmul.f32 %v2952_v2, %v3978_v10  ;;  %v2954_v29 = vpop.eup %2953  ;;  %2969 = vpow2.f32 %v1276_v49  ;;  %v4064_v21 = vadd.f32 %v3824_v43, %v961_v54  ;;  %v1222_v31 = vmul.f32 1.442695, %v1128_v7 }
 0x1c7   : > { %v4058_v3 = vpop.eup %2955  ;;  %v1537_v28 = vmul.f32 %v2954_v29, %v3989_v11  ;;  %2971 = vrcp.f32 %v1316_v25  ;;  %v4069_v32 = vadd.f32 %v3824_v43, %v927_v22  ;;  %v959_v18 = vmul.f32 %v3801_v20, %v877_v40 }
 0x1c8   : > { %v1569_v10 = vsel %vm1441_vm12, %v2952_v2, %v1505_v56  ;;  %v4066_v1 = vpop.eup %2957  ;;  %v1096_v34 = vand.u32 2147483647, %v4064_v21  ;;  %2973 = vrcp.f32 %v1348_v23  ;;  %v1314_v19 = vadd.f32 1.0, %v4058_v3 }
 0x1c9   : > { %v1633_v63 = vmul.f32 %v1569_v10, %v3869_v39  ;;  %v1598_v39 = vsel %vm1470_vm11, %v2948_v35, %v1534_v61  ;;  %v1601_v53 = vsel %vm1473_vm13, %v2954_v29, %v1537_v28  ;;  %v1062_v33 = vand.u32 2147483647, %v4069_v32  ;;  %v752_v28 = vpop.f32.mrf.mxu0 }
 0x1ca   : > { %v1665_v50 = vmul.f32 %v1601_v53, %v3902_v42  ;;  %v1346_v4 = vadd.f32 1.0, %v4066_v1  ;;  %v1160_v62 = vsub.f32 0.0, %v1096_v34  ;;  %v4083_v35 = vadd.f32 %v3824_v43, %v959_v18  ;;  %v880_v18 = vpop.f32.mrf.mxu1 }
 0x1cb   : > { %v2377_v11 = vpack.c.bf16 %v1633_v63, %v1632_v36  ;;  %v2960_v30 = vpop.eup %2959  ;;  %v930_v14 = vmul.f32 %v3801_v20, %v2597_v37  ;;  %2975 = vpow2.f32 %v1222_v31  ;;  %v962_v42 = vmul.f32 %v3801_v20, %v2629_v52 }
 0x1cc   : > { %v2457_v15 = vpack.c.bf16 %v1665_v50, %v1664_v46  ;;  %v1503_v48 = vmul.f32 %v2960_v30, %v4003_v44  ;;  %v1286_v0 = vmul.f32 1.442695, %v1160_v62  ;;  %v1126_v47 = vsub.f32 0.0, %v1062_v33 }
 0x1cd   : > { %2489 = vst [vmem:[%s3567_s8 + $0x58] sm:$0xff] %v2377_v11   ;;  %v2962_v5 = vpop.eup %2961  ;;  %v1094_v2 = vand.u32 2147483647, %v4083_v35  ;;  %v4090_v36 = vadd.f32 %v3824_v43, %v930_v14  ;;  %v1662_v45 = vmul.f32 %v1598_v39, %v3866_v27  ;;  %2977 = vrcp.f32 %v1314_v19 }
 0x1ce   : > { %2505 = vst [vmem:[%s3567_s8 + $0xd8] sm:$0xff] %v2457_v15   ;;  %v1567_v26 = vsel %vm1439_vm14, %v2960_v30, %v1503_v48  ;;  %v1535_v9 = vmul.f32 %v2962_v5, %v4016_v13  ;;  %v4097_v44 = vpop.eup %2963  ;;  %2979 = vrcp.f32 %v1346_v4  ;;  %v4101_v7 = vadd.f32 %v3824_v43, %v962_v42 }
 0x1cf   : > { %v1631_v56 = vmul.f32 %v1567_v26, %v3919_v60  ;;  %v1158_v25 = vsub.f32 0.0, %v1094_v2  ;;  %v4103_v46 = vpop.eup %2965  ;;  %v1317_v61 = vadd.f32 1.0, %v4097_v44  ;;  %2981 = vpow2.f32 %v1286_v0 }
 0x1d0   : > { %v1599_v27 = vsel %vm1471_vm15, %v2962_v5, %v1535_v9  ;;  %v1065_v13 = vand.u32 2147483647, %v4090_v36  ;;  %v4109_v49 = vpop.eup %2967  ;;  %v1349_v40 = vadd.f32 1.0, %v4103_v46  ;;  %v1218_v29 = vmul.f32 1.442695, %v1126_v47 }
 0x1d1   : > { %v2372_v60 = vpack.c.bf16 %v1631_v56, %v4052_v6  ;;  %v1663_v54 = vmul.f32 %v1599_v27, %v3930_v59  ;;  %2983 = vrcp.f32 %v1317_v61  ;;  %v1315_v10 = vadd.f32 1.0, %v4109_v49 }
 0x1d2   : > { %v1282_v23 = vmul.f32 1.442695, %v1158_v25  ;;  %2985 = vrcp.f32 %v1349_v40  ;;  %v1129_v63 = vsub.f32 0.0, %v1065_v13  ;;  %v1097_v6 = vand.u32 2147483647, %v4101_v7 }
 0x1d3   : > { %2488 = vst [vmem:[%s3567_s8 + $0x50] sm:$0xff] %v2372_v60   ;;  %v2452_v22 = vpack.c.bf16 %v1663_v54, %v1662_v45  ;;  %v4116_v31 = vpop.eup %2969  ;;  %2987 = vrcp.f32 %v1315_v10  ;;  %v928_v53 = vmul.f32 %v3801_v20, %v752_v28  ;;  %v960_v52 = vmul.f32 %v3801_v20, %v880_v18 }
 0x1d4   : > { %v2972_v59 = vpop.eup %2971  ;;  %v1347_v37 = vadd.f32 1.0, %v4116_v31  ;;  %2989 = vpow2.f32 %v1218_v29  ;;  %v1224_v39 = vmul.f32 1.442695, %v1129_v63  ;;  %v1161_v11 = vsub.f32 0.0, %v1097_v6 }
 0x1d5   : > { %2504 = vst [vmem:[%s3567_s8 + $0xd0] sm:$0xff] %v2452_v22   ;;  %2991 = vpow2.f32 %v1282_v23  ;;  %v2974_v34 = vpop.eup %2973  ;;  %v4126_v33 = vadd.f32 %v3824_v43, %v928_v53  ;;  %v4129_v30 = vadd.f32 %v3824_v43, %v960_v52  ;;  %v1508_v62 = vmul.f32 %v2972_v59, %v4024_v8 }
 0x1d6   : > { %2993 = vrcp.f32 %v1347_v37  ;;  %v1288_v50 = vmul.f32 1.442695, %v1161_v11  ;;  %v1540_v14 = vmul.f32 %v2974_v34, %v4037_v12  ;;  %vm1444_vm0 = vcmp.ge.f32.partialorder %v3938_v51, 0.0 }
 0x1d7   : > { %2995 = vpow2.f32 %v1224_v39  ;;  %v1063_v15 = vand.u32 2147483647, %v4126_v33  ;;  %v1095_v20 = vand.u32 2147483647, %v4129_v30  ;;  %vm1476_vm1 = vcmp.ge.f32.partialorder %v3951_v41, 0.0 }
 0x1d8   : > { %v4123_v19 = vpop.eup %2975  ;;  %2997 = vpow2.f32 %v1288_v50  ;;  %vm1442_vm2 = vcmp.ge.f32.partialorder %v3961_v24, 0.0  ;;  %vm1474_vm3 = vcmp.ge.f32.partialorder %v3966_v16, 0.0  ;;  %vm1445_vm4 = vcmp.ge.f32.partialorder %v4001_v58, 0.0 }
 0x1d9   : > { %v1320_v42 = vadd.f32 1.0, %v4123_v19  ;;  %v1127_v43 = vsub.f32 0.0, %v1063_v15  ;;  %v1159_v0 = vsub.f32 0.0, %v1095_v20  ;;  %v1572_v47 = vsel %vm1444_vm0, %v2972_v59, %v1508_v62 }
 0x1da   : > { %v2978_v4 = vpop.eup %2977  ;;  %v1604_v2 = vsel %vm1476_vm1, %v2974_v34, %v1540_v14  ;;  %vm1477_vm5 = vcmp.ge.f32.partialorder %v4006_v57, 0.0  ;;  %vm1443_vm6 = vcmp.ge.f32.partialorder %v4009_v38, 0.0  ;;  %v1636_v40 = vmul.f32 %v1572_v47, %v3938_v51 }
 0x1db   : > { %v2980_v48 = vpop.eup %2979  ;;  %v1506_v8 = vmul.f32 %v2978_v4, %v4058_v3  ;;  %v1220_v45 = vmul.f32 1.442695, %v1127_v43  ;;  %v1284_v26 = vmul.f32 1.442695, %v1159_v0  ;;  %2999 = vrcp.f32 %v1320_v42 }
 0x1dc   : > { %v4136_v5 = vpop.eup %2981  ;;  %v1538_v56 = vmul.f32 %v2980_v48, %v4066_v1  ;;  %vm1475_vm7 = vcmp.ge.f32.partialorder %v4028_v55, 0.0  ;;  %vm1448_vm8 = vcmp.ge.f32.partialorder %v4032_v17, 0.0  ;;  %vm1480_vm9 = vcmp.ge.f32.partialorder %v4064_v21, 0.0 }
 0x1dd   : > { %v1352_v27 = vadd.f32 1.0, %v4136_v5  ;;  %3001 = vpow2.f32 %v1220_v45  ;;  %v1570_v60 = vsel %vm1442_vm2, %v2978_v4, %v1506_v8  ;;  %vm1449_vm10 = vcmp.ge.f32.partialorder %v4090_v36, 0.0 }
 0x1de   : > { %v2984_v12 = vpop.eup %2983  ;;  %3003 = vpow2.f32 %v1284_v26  ;;  %v1602_v22 = vsel %vm1474_vm3, %v2980_v48, %v1538_v56  ;;  %v1634_v6 = vmul.f32 %v1570_v60, %v3961_v24  ;;  %vm1481_vm11 = vcmp.ge.f32.partialorder %v4101_v7, 0.0 }
 0x1df   : > { %v2986_v9 = vpop.eup %2985  ;;  %v1509_v25 = vmul.f32 %v2984_v12, %v4097_v44  ;;  %3005 = vrcp.f32 %v1352_v27  ;;  %vm1446_vm12 = vcmp.ge.f32.partialorder %v4069_v32, 0.0  ;;  %vm1478_vm13 = vcmp.ge.f32.partialorder %v4083_v35, 0.0 }
 0x1e0   : > { %v2988_v61 = vpop.eup %2987  ;;  %v1541_v3 = vmul.f32 %v2986_v9, %v4103_v46  ;;  %v1668_v46 = vmul.f32 %v1604_v2, %v3951_v41  ;;  %vm1447_vm14 = vcmp.ge.f32.partialorder %v4126_v33, 0.0  ;;  %vm1479_vm15 = vcmp.ge.f32.partialorder %v4129_v30, 0.0 }
 0x1e1   : > { %v4150_v13 = vpop.eup %2989  ;;  %v1573_v1 = vsel %vm1445_vm4, %v2984_v12, %v1509_v25  ;;  %v1507_v44 = vmul.f32 %v2988_v61, %v4109_v49 }
 0x1e2   : > { %v4157_v54 = vpop.eup %2991  ;;  %v1637_v29 = vmul.f32 %v1573_v1, %v4001_v58  ;;  %v1605_v10 = vsel %vm1477_vm5, %v2986_v9, %v1541_v3  ;;  %v1318_v53 = vadd.f32 1.0, %v4150_v13 }
 0x1e3   : > { %v2994_v23 = vpop.eup %2993  ;;  %v1669_v63 = vmul.f32 %v1605_v10, %v4006_v57  ;;  %v1571_v28 = vsel %vm1443_vm6, %v2988_v61, %v1507_v44  ;;  %v1666_v57 = vmul.f32 %v1602_v22, %v3966_v16 }
 0x1e4   : > { %v2996_v49 = vpop.eup %2995  ;;  %v2387_v18 = vpack.c.bf16 %v1637_v29, %v1636_v40  ;;  %v1635_v51 = vmul.f32 %v1571_v28, %v4009_v38  ;;  %v1539_v41 = vmul.f32 %v2994_v23, %v4116_v31  ;;  %v1350_v38 = vadd.f32 1.0, %v4157_v54 }
 0x1e5   : > { %v2467_v58 = vpack.c.bf16 %v1669_v63, %v1668_v46  ;;  %v1321_v59 = vadd.f32 1.0, %v2996_v49  ;;  %v2998_v37 = vpop.eup %2997 }
 0x1e6   : > { %2491 = vst [vmem:[%s3567_s8 + $0x68] sm:$0xff] %v2387_v18   ;;  %v2382_v39 = vpack.c.bf16 %v1635_v51, %v1634_v6  ;;  %v1603_v11 = vsel %vm1475_vm7, %v2994_v23, %v1539_v41  ;;  %v1353_v31 = vadd.f32 1.0, %v2998_v37 }
 0x1e7   : > { %2507 = vst [vmem:[%s3567_s8 + $0xe8] sm:$0xff] %v2467_v58   ;;  %v1667_v24 = vmul.f32 %v1603_v11, %v4028_v55  ;;  %3007 = vrcp.f32 %v1321_v59 }
 0x1e8   : > { %2490 = vst [vmem:[%s3567_s8 + $0x60] sm:$0xff] %v2382_v39   ;;  %3009 = vrcp.f32 %v1353_v31  ;;  %v3000_v52 = vpop.eup %2999 }
 0x1e9   : > { %v2462_v34 = vpack.c.bf16 %v1667_v24, %v1666_v57  ;;  %3011 = vrcp.f32 %v1318_v53  ;;  %v1512_v15 = vmul.f32 %v3000_v52, %v4123_v19 }
 0x1ea   : > { %3013 = vrcp.f32 %v1350_v38  ;;  %v3002_v16 = vpop.eup %3001 }
 0x1eb   : > { %2506 = vst [vmem:[%s3567_s8 + $0xe0] sm:$0xff] %v2462_v34   ;;  %v3004_v50 = vpop.eup %3003  ;;  %v1319_v4 = vadd.f32 1.0, %v3002_v16  ;;  %v1576_v48 = vsel %vm1448_vm8, %v3000_v52, %v1512_v15 }
 0x1ec   : > { %v1351_v62 = vadd.f32 1.0, %v3004_v50  ;;  %v3006_v14 = vpop.eup %3005  ;;  %v1640_v19 = vmul.f32 %v1576_v48, %v4032_v17 }
 0x1ed   : > { %3015 = vrcp.f32 %v1319_v4  ;;  %v1544_v55 = vmul.f32 %v3006_v14, %v4136_v5 }
 0x1ee   : > { %3017 = vrcp.f32 %v1351_v62 }
 0x1ef   : > { %v1608_v8 = vsel %vm1480_vm9, %v3006_v14, %v1544_v55 }
 0x1f0   : > { %v1672_v26 = vmul.f32 %v1608_v8, %v4064_v21 }
 0x1f4   : > { %v3008_v20 = vpop.eup %3007 }
 0x1f5   : > { %v1513_v42 = vmul.f32 %v3008_v20, %v2996_v49  ;;  %v3010_v43 = vpop.eup %3009 }
 0x1f6   : > { %v3012_v0 = vpop.eup %3011  ;;  %v1545_v47 = vmul.f32 %v3010_v43, %v2998_v37 }
 0x1f7   : > { %v1577_v12 = vsel %vm1449_vm10, %v3008_v20, %v1513_v42  ;;  %v3014_v2 = vpop.eup %3013  ;;  %v1510_v9 = vmul.f32 %v3012_v0, %v4150_v13 }
 0x1f8   : > { %v1641_v5 = vmul.f32 %v1577_v12, %v4090_v36  ;;  %v1609_v45 = vsel %vm1481_vm11, %v3010_v43, %v1545_v47  ;;  %v1542_v27 = vmul.f32 %v3014_v2, %v4157_v54 }
 0x1f9   : > { %v1673_v25 = vmul.f32 %v1609_v45, %v4101_v7  ;;  %v1574_v3 = vsel %vm1446_vm12, %v3012_v0, %v1510_v9 }
 0x1fa   : > { %v2397_v56 = vpack.c.bf16 %v1641_v5, %v1640_v19  ;;  %v3016_v17 = vpop.eup %3015  ;;  %v1606_v60 = vsel %vm1478_vm13, %v3014_v2, %v1542_v27  ;;  %v1638_v1 = vmul.f32 %v1574_v3, %v4069_v32 }
 0x1fb   : > { %v2477_v61 = vpack.c.bf16 %v1673_v25, %v1672_v26  ;;  %v3018_v36 = vpop.eup %3017  ;;  %v1511_v21 = vmul.f32 %v3016_v17, %v3002_v16  ;;  %v1670_v40 = vmul.f32 %v1606_v60, %v4083_v35 }
 0x1fc   : > { %2493 = vst [vmem:[%s3567_s8 + $0x78] sm:$0xff] %v2397_v56   ;;  %v1543_v7 = vmul.f32 %v3018_v36, %v3004_v50 }
 0x1fd   : > { %2509 = vst [vmem:[%s3567_s8 + $0xf8] sm:$0xff] %v2477_v61   ;;  %v1575_v13 = vsel %vm1447_vm14, %v3016_v17, %v1511_v21 }
 0x1fe   : > { %v1639_v44 = vmul.f32 %v1575_v13, %v4126_v33  ;;  %v1607_v54 = vsel %vm1479_vm15, %v3018_v36, %v1543_v7 }
 0x1ff   : > { %v1671_v46 = vmul.f32 %v1607_v54, %v4129_v30 }
 0x200   : > { %v2392_v29 = vpack.c.bf16 %v1639_v44, %v1638_v1 }
 0x201   : > { %v2472_v10 = vpack.c.bf16 %v1671_v46, %v1670_v40 }
 0x202   : > { %2492 = vst [vmem:[%s3567_s8 + $0x70] sm:$0xff] %v2392_v29  }
 0x203   : > { %2508 = vst [vmem:[%s3567_s8 + $0xf0] sm:$0xff] %v2472_v10  }
 0x204   : > { %3088 = shalt.err (!%p3085_p3)
}
 0x205   : > { %s3089_s27 = scalar_lea.hbm %s4204_s1, 4096  ;;  %s3093_s9 = scalar_lea.hbm %s4259_s4, 16384 }
 0x206   : > { %p3090_p5 = scmp.ne.s32.totalorder %s4204_s1, %s3089_s27  ;;  %p3094_p9 = scmp.lt.s32.totalorder %s4204_s1, %s4259_s4 }
 0x207   : > { %p3095_p11 = scmp.lt.s32.totalorder %s3093_s9, %s3089_s27 }
 0x208   : > { %p3091_p7 = pnand %p3090_p5, %p4276_p4 }
 0x209   : > { %p3096_p10 = por %p3095_p11, %p3094_p9 }
 0x20a   : > { %p3092_p6 = pneg %p3091_p7 }
 0x20c   : > { %p3097_p1 = pnand %p3096_p10, %p3092_p6 }
 0x20e   : > { %3100 = shalt.err (!%p3097_p1)
}
 0x20f   : > { %s3166_s14 = smov 64   ;;  %s3167_s11 = smov 4  }
 0x210   : > { %2652 = dma.vmem_to_hbm [thread:$0]  (%p4276_p4), %s4206_s29, 4096, %s4204_s1, %s1995_s18, %s3166_s14, %s3166_s14, %s3167_s11  }
 0x211 PF: > { %p2669_p8 = scmp.ge.s32.totalorder %s3159_s20, 2  ;;  %s2024_s12 = sand.u32 1, %s3139_s15  }
 0x212   : > { %p4277_p12 = scmp.ne.s32.totalorder %s4267_s26, 0  ;;  %s2025_s22 = scalar_lea.sflag [#allocation4], %s2024_s12 }
 0x214   : > { %p2663_p13 = pnand %p2669_p8, %p4277_p12 }
 0x216   : > { %p2664_p0 = pneg %p2663_p13 }
 0x218   : > { %3134 = dma.done.wait (%p2664_p0), %s2025_s22, 4096  }
 0x219   : > { %3136 = vsyncadd (%p2664_p0), %s2025_s22, 4294963200  ;;  %s21_s20 = sadd.s32 1, %s3159_s20   ;;  %s4278_s15 = smov %s3143_s16 }
 0x21a   : > { %p18_p2 = scmp.ge.s32.totalorder %s21_s20, 6   ;;  %s4279_s16 = smov %s3147_s17 }
 0x21b   : > { %s4280_s17 = smov %s3291_s28  ;;  %s4281_s18 = smov %s3155_s19 }
 0x21c   : > { %s4282_s19 = smov %s4284_s5  ;;  %20 = sbr.rel (!%p18_p2) target bundleno = 9 (0x9), region = 92 }
 0x221   :  { %2030 = vsyncpa [#allocation3], 1 }
 0x222   :  { %2032 = vsyncpa [#allocation3 + $0x1], 1 }
 0x223   :  { %2033 = vsyncpa [#allocation6], 1 }
 0x224   :  { %2034 = vsyncpa [#allocation4], 1 }
 0x225   :  { %2036 = vsyncpa [#allocation4 + $0x1], 1 }

</bundles_post_ra>
